<compile_context>
chip_gen: v7x
topology: tpu7x:2x2x1
jax: 0.10.0
libtpu: 0.0.40
codegen_flags: <defaults>
</compile_context>

<pallas_src>
import jax
import jax.numpy as jnp
from jax.experimental import pallas as pl
from jax.experimental.pallas import tpu as pltpu


def _round_up(x, m):
    return ((x + m - 1) // m) * m


def _pick_tile(dim, base, cap):
    """Largest tile (multiple of `base`, <= cap) dividing round_up(dim, base).

    Guarantees no padding waste beyond the mandatory (8, 128) alignment.
    Returns (tile, padded_dim).
    """
    padded = _round_up(dim, base)
    t = max(base, min((cap // base) * base, padded))
    while padded % t != 0:
        t -= base
    return t, padded


def _linear_kernel(x_ref, w_ref, b_ref, o_ref, acc_ref):
    # x_ref: (tm, tk)   w_ref: (tk, tn)  (pre-transposed [nin, nout] layout)
    # b_ref: (1, tn) f32   o_ref: (tm, tn)   acc_ref: (tm, tn) f32 scratch
    k = pl.program_id(2)

    @pl.when(k == 0)
    def _():
        # Fold bias into the accumulator init: added exactly once per (i, j) tile.
        acc_ref[...] = jnp.broadcast_to(b_ref[...], acc_ref.shape)

    acc_ref[...] += jnp.dot(
        x_ref[...], w_ref[...], preferred_element_type=jnp.float32
    )

    @pl.when(k == pl.num_programs(2) - 1)
    def _():
        # Output tile written exactly once per (i, j); pure cast + store.
        o_ref[...] = acc_ref[...].astype(o_ref.dtype)


class ResLinPallas:
    """Pallas TPU equivalent of resLin.forward (nn.Linear(nin, nout)).

    Weight/bias are relaid out once at construction (transpose + pad); the
    per-call work is only padding x and launching the tiled matmul kernel.
    """

    def __init__(self, weight, bias, *, tn_max=512, tk_max=1024,
                 use_bf16_operands=False):
        nout, nin = weight.shape
        assert bias.shape == (nout,)
        self.nin, self.nout = nin, nout
        self.use_bf16 = use_bf16_operands

        # Lane-dim tiles: divisors of the 128-aligned dims -> no wasted N/K compute.
        self.tn, self.Np = _pick_tile(nout, 128, tn_max)
        self.tk, self.Kp = _pick_tile(nin, 128, tk_max)

        w_t = jnp.transpose(weight)                              # [nin, nout]
        if (self.Kp, self.Np) != (nin, nout):
            w_t = jnp.pad(w_t, ((0, self.Kp - nin), (0, self.Np - nout)))
        if use_bf16_operands:
            w_t = w_t.astype(jnp.bfloat16)                       # accuracy trade-off
        b_p = bias.astype(jnp.float32)
        if self.Np != nout:
            b_p = jnp.pad(b_p, (0, self.Np - nout))
        self.w = w_t
        self.b = b_p.reshape(1, self.Np)

    def __call__(self, x, *, tm_max=512):
        batch, nin = x.shape
        assert nin == self.nin
        Kp, Np, tk, tn = self.Kp, self.Np, self.tk, self.tn

        tm, Mp = _pick_tile(batch, 8, tm_max)

        # Expose >=2 parallel blocks so v7x's two TensorCores both get work
        # (harmless on single-TC v5e/v6e).
        if (Mp // tm) * (Np // tn) < 2:
            if tm >= 16 and tm % 16 == 0:
                tm //= 2
            elif tn >= 256 and tn % 256 == 0:
                tn //= 2

        x_p = x.astype(jnp.bfloat16) if self.use_bf16 else x
        if (Mp, Kp) != (batch, nin):
            x_p = jnp.pad(x_p, ((0, Mp - batch), (0, Kp - nin)))

        grid = (Mp // tm, Np // tn, Kp // tk)

        # Explicit VMEM budget: double-buffered x/W/out tiles + f32 accumulator,
        # clamped so a v6e-style config cannot overshoot v7x's 64 MiB physical VMEM.
        elt = 2 if self.use_bf16 else 4
        vmem_bytes = (2 * (tm * tk + tk * tn) * elt     # double-buffered inputs
                      + 2 * tm * tn * 4                 # double-buffered output
                      + tm * tn * 4                     # accumulator scratch
                      + 2 * tn * 4)                     # bias
        vmem_limit = min(max(int(vmem_bytes * 1.5) + (1 << 20), 32 * 1024 * 1024),
                         48 * 1024 * 1024)

        cost = pl.CostEstimate(
            flops=2 * Mp * Np * Kp,
            transcendentals=0,
            bytes_accessed=(Mp * Kp * elt * grid[1]     # x re-read per N tile
                            + Kp * Np * elt * grid[0]   # W re-read per M tile
                            + Mp * Np * 4               # output write
                            + Np * 4 * grid[0]),        # bias
        )

        out_p = pl.pallas_call(
            _linear_kernel,
            out_shape=jax.ShapeDtypeStruct((Mp, Np), jnp.float32),
            grid=grid,
            in_specs=[
                pl.BlockSpec((tm, tk), lambda i, j, k: (i, k)),   # x tile
                pl.BlockSpec((tk, tn), lambda i, j, k: (k, j)),   # W^T tile
                pl.BlockSpec((1, tn), lambda i, j, k: (0, j)),    # bias (K-resident)
            ],
            out_specs=pl.BlockSpec((tm, tn), lambda i, j, k: (i, j)),
            scratch_shapes=[pltpu.VMEM((tm, tn), jnp.float32)],
            compiler_params=pltpu.CompilerParams(
                dimension_semantics=("parallel", "parallel", "arbitrary"),
                vmem_limit_bytes=vmem_limit,
            ),
            cost_estimate=cost,
        )(x_p, self.w, self.b)

        if (Mp, Np) != (batch, self.nout):
            out_p = out_p[:batch, :self.nout]
        return out_p


def _reference(x, weight, bias):
    return x @ weight.T + bias


if __name__ == "__main__":
    key = jax.random.PRNGKey(0)

    # Case 1: exercises the tiled grid (zero-waste tn=384, tm halved to expose
    # 2 parallel M blocks for multi-TensorCore chips).
    batch, nin, nout = 256, 512, 384
    k_x, k_w, k_b, k_rest = jax.random.split(key, 4)
    bound = 1.0 / (nin ** 0.5)
    x = jax.random.normal(k_x, (batch, nin), dtype=jnp.float32)
    weight = jax.random.uniform(k_w, (nout, nin), minval=-bound, maxval=bound,
                                dtype=jnp.float32)
    bias = jax.random.uniform(k_b, (nout,), minval=-bound, maxval=bound,
                              dtype=jnp.float32)

    layer = ResLinPallas(weight, bias)          # one-time weight relayout (cached)
    out = jax.block_until_ready(layer(x))
    ref = _reference(x, weight, bias)
    assert out.shape == (batch, nout)
    assert jnp.allclose(out, ref, atol=1e-4, rtol=1e-4)

    # Case 2: small odd shapes typical of resLin usage (padded to (8,128) internally).
    batch2, nin2, nout2 = 8, 32, 16
    k_x2, k_w2, k_b2 = jax.random.split(k_rest, 3)
    bound2 = 1.0 / (nin2 ** 0.5)
    x2 = jax.random.normal(k_x2, (batch2, nin2), dtype=jnp.float32)
    weight2 = jax.random.uniform(k_w2, (nout2, nin2), minval=-bound2, maxval=bound2,
                                 dtype=jnp.float32)
    bias2 = jax.random.uniform(k_b2, (nout2,), minval=-bound2, maxval=bound2,
                               dtype=jnp.float32)

    layer2 = ResLinPallas(weight2, bias2)
    out2 = jax.block_until_ready(layer2(x2))
    ref2 = _reference(x2, weight2, bias2)
    assert out2.shape == (batch2, nout2)
    assert jnp.allclose(out2, ref2, atol=1e-5, rtol=1e-5)

    print("KERNEL_OK")
</pallas_src>

<mosaic_0001>
module attributes {stable_mosaic.version = 11 : i64} {
  func.func @_linear_kernel(%arg0: i32, %arg1: i32, %arg2: i32, %arg3: memref<128x512xf32, #tpu.memory_space<vmem>>, %arg4: memref<512x384xf32, #tpu.memory_space<vmem>>, %arg5: memref<1x384xf32, #tpu.memory_space<vmem>>, %arg6: memref<128x384xf32, #tpu.memory_space<vmem>>, %arg7: memref<128x384xf32, #tpu.memory_space<vmem>>) attributes {dimension_semantics = [#tpu.dimension_semantics<parallel>, #tpu.dimension_semantics<parallel>, #tpu.dimension_semantics<arbitrary>], iteration_bounds = array<i64: 2, 1, 1>, scalar_prefetch = 0 : i64, scratch_operands = 1 : i64, tpu.core_type = #tpu.core_type<tc>, window_params = [{transform_indices = @transform_0, window_bounds = array<i64: 128, 512>}, {transform_indices = @transform_1, window_bounds = array<i64: 512, 384>}, {transform_indices = @transform_2, window_bounds = array<i64: 1, 384>}, {transform_indices = @transform_3, window_bounds = array<i64: 128, 384>}]} {
    %c0_i32 = arith.constant 0 : i32
    %0 = arith.cmpi eq, %arg2, %c0_i32 : i32
    %1 = arith.extui %0 : i1 to i32
    %c0_i32_0 = arith.constant 0 : i32
    %2 = arith.cmpi ne, %1, %c0_i32_0 : i32
    scf.if %2 {
      %c0_10 = arith.constant 0 : index
      %c0_11 = arith.constant 0 : index
      %12 = vector.load %arg5[%c0_10, %c0_11] : memref<1x384xf32, #tpu.memory_space<vmem>>, vector<1x384xf32>
      %13 = vector.shape_cast %12 : vector<1x384xf32> to vector<1x384xf32>
      %14 = vector.broadcast %13 : vector<1x384xf32> to vector<128x384xf32>
      %c0_12 = arith.constant 0 : index
      %c0_13 = arith.constant 0 : index
      %15 = vector.load %arg7[%c0_12, %c0_13] : memref<128x384xf32, #tpu.memory_space<vmem>>, vector<128x384xf32>
      tpu.vector_store %arg7[%c0_12, %c0_13], %14 {strides = array<i32>} : memref<128x384xf32, #tpu.memory_space<vmem>>, vector<128x384xf32>,
    } else {
    }
    %c0 = arith.constant 0 : index
    %c0_1 = arith.constant 0 : index
    %3 = vector.load %arg7[%c0, %c0_1] : memref<128x384xf32, #tpu.memory_space<vmem>>, vector<128x384xf32>
    %c0_2 = arith.constant 0 : index
    %c0_3 = arith.constant 0 : index
    %4 = vector.load %arg3[%c0_2, %c0_3] : memref<128x512xf32, #tpu.memory_space<vmem>>, vector<128x512xf32>
    %c0_4 = arith.constant 0 : index
    %c0_5 = arith.constant 0 : index
    %5 = vector.load %arg4[%c0_4, %c0_5] : memref<512x384xf32, #tpu.memory_space<vmem>>, vector<512x384xf32>
    %cst = arith.constant dense<0.000000e+00> : vector<128x384xf32>
    %6 = tpu.matmul %4, %5, %cst {dimension_numbers = #tpu.dot_dimension_numbers<[1], [0], [0], [1], [0, 0, 1, 1], [], []>} : vector<128x512xf32>, vector<512x384xf32>, vector<128x384xf32> -> vector<128x384xf32>
    %7 = arith.addf %3, %6 : vector<128x384xf32>
    %c0_6 = arith.constant 0 : index
    %c0_7 = arith.constant 0 : index
    %8 = vector.load %arg7[%c0_6, %c0_7] : memref<128x384xf32, #tpu.memory_space<vmem>>, vector<128x384xf32>
    tpu.vector_store %arg7[%c0_6, %c0_7], %7 {strides = array<i32>} : memref<128x384xf32, #tpu.memory_space<vmem>>, vector<128x384xf32>,
    %c0_i32_8 = arith.constant 0 : i32
    %9 = arith.cmpi eq, %arg2, %c0_i32_8 : i32
    %10 = arith.extui %9 : i1 to i32
    %c0_i32_9 = arith.constant 0 : i32
    %11 = arith.cmpi ne, %10, %c0_i32_9 : i32
    scf.if %11 {
      %c0_10 = arith.constant 0 : index
      %c0_11 = arith.constant 0 : index
      %12 = vector.load %arg7[%c0_10, %c0_11] : memref<128x384xf32, #tpu.memory_space<vmem>>, vector<128x384xf32>
      %c0_12 = arith.constant 0 : index
      %c0_13 = arith.constant 0 : index
      %13 = vector.load %arg6[%c0_12, %c0_13] : memref<128x384xf32, #tpu.memory_space<vmem>>, vector<128x384xf32>
      tpu.vector_store %arg6[%c0_12, %c0_13], %12 {strides = array<i32>} : memref<128x384xf32, #tpu.memory_space<vmem>>, vector<128x384xf32>,
    } else {
    }
    return
  }
  func.func @transform_0(%arg0: i32, %arg1: i32, %arg2: i32) -> (i32, i32) {
    %c0_i32 = arith.constant 0 : i32
    return %arg0, %arg2 : i32, i32
  }
  func.func @transform_1(%arg0: i32, %arg1: i32, %arg2: i32) -> (i32, i32) {
    %c0_i32 = arith.constant 0 : i32
    return %arg2, %arg1 : i32, i32
  }
  func.func @transform_2(%arg0: i32, %arg1: i32, %arg2: i32) -> (i32, i32) {
    %c0_i32 = arith.constant 0 : i32
    %c0_i32_0 = arith.constant 0 : i32
    return %c0_i32, %arg1 : i32, i32
  }
  func.func @transform_3(%arg0: i32, %arg1: i32, %arg2: i32) -> (i32, i32) {
    %c0_i32 = arith.constant 0 : i32
    return %arg0, %arg1 : i32, i32
  }
}

</mosaic_0001>

<bundles_post_ra>
// kernel: tpu_custom_call.1
= control target key start
LH: loop header
LB: loop body
LE: loop exit
PB: predicated region body
PF: predicated region fallthrough
CT: control target
= control target key end

     0   :  { %8 = vsyncpa [#allocation4], 0  ;;  %s2851_s0 = inlined_call_operand.hbm [shape: f32[256,512], index: 0, kind: input, shape index: {}]   ;;  %s2852_s1 = inlined_call_operand.hbm [shape: f32[512,384], index: 1, kind: input, shape index: {}]   ;;  %s2853_s2 = inlined_call_operand.vmem [shape: f32[1,384], index: 2, kind: input, shape index: {}]   ;;  %s2854_s3 = inlined_call_operand.hbm [shape: f32[256,384], index: 3, kind: output, shape index: {}]  }
   0x1   :  { %10 = vsyncpa [#allocation4 + $0x1], 0 }
   0x2   :  { %11 = vsyncpa [#allocation7], 0 }
   0x3   :  { %12 = vsyncpa [#allocation5], 0 }
   0x4   :  { %14 = vsyncpa [#allocation5 + $0x1], 0  ;;  %s2242_s12 = smov 0   ;;  %s2244_s13 = smov 0  }
   0x5   :  { %s2246_s14 = smov 0   ;;  %s2248_s15 = smov 0  }
   0x6   :  { %s2250_s16 = smov 0   ;;  %s2252_s17 = smov 0  }
   0x7 LB: > { %s1582_s18 = sadd.s32 4294967295, %s2211_s17   ;;  %s1583_s19 = sadd.s32 4294967294, %s2211_s17   ;;  %s2211_s17 = sphi %s2252_s17, %s20_s17   ;;  %s2207_s16 = sphi %s2250_s16, %s2878_s16   ;;  %s2203_s15 = sphi %s2248_s15, %s2877_s15   ;;  %s2199_s14 = sphi %s2246_s14, %s2876_s14   ;;  %s2195_s13 = sphi %s2244_s13, %s2875_s13   ;;  %s2191_s12 = sphi %s2242_s12, %s2874_s12  }
   0x8   : > { %p61_p0 = scmp.ne.s32.totalorder %s2195_s13, %s2191_s12  ;;  %p2276_p1 = scmp.eq.s32.totalorder %s1582_s18, 0 }
   0x9   : > { %p2280_p2 = scmp.eq.s32.totalorder %s1582_s18, 1  ;;  %p147_p3 = scmp.eq.s32.totalorder %s1583_s19, 1 }
   0xa   : > { %s2859_s20 = scalar_select %p2276_p1, 1, 0 }
   0xb   : > { %s2860_s21 = scalar_select %p2280_p2, 1, 0 }
   0xc   : > { %p2286_p4 = por %p2276_p1, %p61_p0  ;;  %p1584_p5 = scmp.ge.s32.totalorder %s2211_s17, 1 }
   0xd   : > { %p2291_p6 = por %p147_p3, %p61_p0  ;;  %p154_p7 = scmp.lt.s32.totalorder %s2211_s17, 3 }
   0xe   : > { %s2861_s22 = scalar_select %p2286_p4, 1, 0 }
   0xf   : > { %s2862_s23 = scalar_select %p2291_p6, 1, 0 }
  0x10   : > { %p2296_p8 = pnand %p1584_p5, %p154_p7  ;;  %s2213_s25 = smov [#allocation6]  }
  0x11   : > { %s172_s26 = sshll.u32 %s2213_s25, 4  ;;  %s39_s28 = sadd.s32 1, %s2207_s16  ;;  %s173_s26 = int_to_ptr.vmem [resolvable:$true] %s172_s26 }
  0x12   : > { %s2863_s24 = scalar_select %p2296_p8, 1, 0 }
  0x13   : > { %p1996_p9 = pneg %p2296_p8  ;;  %s2067_s4 = scalar_lea.hbm %s2852_s1, 24576 }
  0x14   : > { %p2068_p12 = scmp.ne.s32.totalorder %s2852_s1, %s2067_s4  ;;  %p2074_p5 = scmp.lt.u32.totalorder %s2067_s4, %s2852_s1 }
  0x15   : > { %p2305_p11 = pnand %p1996_p9, %p2276_p1 }
  0x17   : > { %p2069_p13 = pneg %p2305_p11 }
  0x19   : > { %p2070_p0 = pnand %p2069_p13, %p2068_p12 }
  0x1b   : > { %p2071_p3 = pneg %p2070_p0 }
  0x1d   : > { %p2076_p7 = pnand %p2074_p5, %p2071_p3 }
  0x1f   : > { %2079 = shalt.err (!%p2076_p7)
}
  0x20   : > { %s2080_s9 = scalar_lea.vmem %s173_s26, 24576  ;;  %p2088_p1 = scmp.lt.s32.totalorder %s173_s26, %s173_s26 }
  0x21   : > { %p2081_p9 = scmp.ne.s32.totalorder %s173_s26, %s2080_s9  ;;  %p2089_p4 = scmp.lt.s32.totalorder %s2080_s9, %s2080_s9 }
  0x23   : > { %p2083_p10 = pnand %p2081_p9, %p2069_p13  ;;  %p2090_p8 = por %p2089_p4, %p2088_p1 }
  0x25   : > { %p2084_p6 = pneg %p2083_p10 }
  0x27   : > { %p2091_p2 = pnand %p2090_p8, %p2084_p6 }
  0x29   : > { %2094 = shalt.err (!%p2091_p2)
}
  0x2a   : > { %s2214_s10 = smov 384   ;;  %s2215_s11 = smov 24  }
  0x2b   : > { %1999 = dma.hbm_to_vmem [thread:$0]  (!%p2305_p11), %s2852_s1, 24576, %s173_s26, [#allocation7], %s2214_s10, %s2214_s10, %s2215_s11  }
  0x2c   : > { %p41_p1 = scmp.ge.s32.totalorder %s39_s28, 2  ;;  %s48_s25 = sadd.s32 1, %s2199_s14 }
  0x2d   : > { %p55_p2 = scmp.ne.s32.totalorder %s2199_s14, %s2195_s13  ;;  %p56_p4 = scmp.eq.s32.totalorder %s2211_s17, 0 }
  0x2e   : > { %s2880_s28 = smov (%p41_p1, %s39_s28), 0  ;;  %p2866_p8 = scmp.ne.s32.totalorder %s2860_s21, 0 }
  0x2f   : > { %p2332_p6 = por %p56_p4, %p55_p2  ;;  %s43_s27 = ssub.s32 %s2207_s16, %s2880_s28 }
  0x30   : > { %p2338_p10 = por %p2866_p8, %p55_p2  ;;  %p2009_p12 = scmp.lt.s32.totalorder %s2211_s17, 2 }
  0x31   : > { %p46_p11 = scmp.eq.s32.totalorder %s43_s27, 0  ;;  %s194_s26 = sand.u32 1, %s2199_s14  }
  0x32   : > { %s1588_s4 = sshll.u32 %s194_s26, 9  ;;  %s1601_s6 = sshll.u32 %s2207_s16, 13 }
  0x33   : > { %s2347_s5 = scalar_select %p46_p11, %s2199_s14, %s48_s25  }
  0x34   : > { %s2353_s9 = scalar_lea.hbm %s2851_s0, %s1601_s6  ;;  %s198_s21 = scalar_lea.vmem [#allocation3], %s1588_s4 }
  0x35   : > { %s208_s10 = sshll.u32 %s198_s21, 4  ;;  %p2359_p13 = pnand %p2009_p12, %p2332_p6  ;;  %s2355_s10 = int_to_ptr.vmem [resolvable:$true] %s208_s10 }
  0x36   : > { %s2363_s18 = scalar_lea.sflag [#allocation4], %s194_s26  ;;  %s2095_s19 = scalar_lea.hbm %s2353_s9, 8192 }
  0x37   : > { %p2096_p0 = scmp.ne.s32.totalorder %s2353_s9, %s2095_s19  ;;  %p2097_p3 = pneg %p2359_p13 }
  0x38   : > { %s2100_s29 = scalar_lea.hbm %s2851_s0, 16384  ;;  %p2101_p9 = scmp.lt.u32.totalorder %s2353_s9, %s2851_s0 }
  0x39   : > { %p2098_p5 = pnand %p2097_p3, %p2096_p0  ;;  %p2102_p1 = scmp.lt.u32.totalorder %s2100_s29, %s2095_s19 }
  0x3a   : > { %p2104_p4 = scmp.lt.u32.totalorder %s2095_s19, %s2353_s9 }
  0x3b   : > { %p2099_p7 = pneg %p2098_p5  ;;  %p2103_p2 = por %p2102_p1, %p2101_p9 }
  0x3d   : > { %p2105_p6 = por %p2104_p4, %p2103_p2 }
  0x3f   : > { %p2106_p8 = pnand %p2105_p6, %p2099_p7 }
  0x41   : > { %2109 = shalt.err (!%p2106_p8)
}
  0x42   : > { %s2110_s26 = scalar_lea.vmem %s2355_s10, 8192  ;;  %s2216_s7 = smov [#allocation3]  }
  0x43   : > { %p2111_p12 = scmp.ne.s32.totalorder %s2355_s10, %s2110_s26  ;;  %s2115_s8 = sshll.u32 %s2216_s7, 4  ;;  %s2116_s8 = int_to_ptr.vmem [resolvable:$false] %s2115_s8 }
  0x44   : > { %s2117_s21 = scalar_lea.vmem %s2116_s8, 16384  ;;  %p2118_p5 = scmp.lt.s32.totalorder %s2355_s10, %s2116_s8 }
  0x45   : > { %p2113_p11 = pnand %p2111_p12, %p2097_p3  ;;  %p2119_p9 = scmp.lt.s32.totalorder %s2117_s21, %s2110_s26 }
  0x47   : > { %p2114_p0 = pneg %p2113_p11  ;;  %p2120_p1 = por %p2119_p9, %p2118_p5 }
  0x49   : > { %p2121_p2 = pnand %p2120_p1, %p2114_p0 }
  0x4b   : > { %2124 = shalt.err (!%p2121_p2)
}
  0x4c   : > { %s2217_s19 = smov 512   ;;  %s2218_s25 = smov 32  }
  0x4d   : > { %2003 = dma.hbm_to_vmem [thread:$0]  (!%p2359_p13), %s2353_s9, 8192, %s2355_s10, %s2363_s18, %s2217_s19, %s2217_s19, %s2218_s25  }
  0x4e   : > { %p2869_p3 = scmp.ne.s32.totalorder %s2863_s24, 0 }
  0x4f   : > { %s2394_s27 = sand.u32 (!%p2869_p3), 1, %s2195_s13   ;;  %p2870_p7 = scmp.ne.s32.totalorder (!%p2869_p3), %s2861_s22, 0 }
  0x50   : > { %220 = sbr.rel (%p2869_p3) target bundleno = 513 (0x201), region = 32  ;;  %s1593_s29 = sshll.u32 (!%p2869_p3), %s2394_s27, 9 }
  0x51   : > { %s223_s4 = scalar_lea.sflag (!%p2869_p3), [#allocation4], %s2394_s27  ;;  %s2398_s6 = scalar_lea.vmem (!%p2869_p3), [#allocation3], %s1593_s29 }
  0x57   : > { %2178 = dma.done.wait (%p2870_p7), %s223_s4, 8192  }
  0x58   : > { %2180 = vsyncadd (%p2870_p7), %s223_s4, 4294959104  ;;  %p2871_p13 = scmp.ne.s32.totalorder %s2859_s20, 0 }
  0x5a   : > { %2182 = dma.done.wait (%p2871_p13), [#allocation7], 24576  }
  0x5b   : > { %2184 = vsyncadd (%p2871_p13), [#allocation7], 4294942720  ;;  %v450_v0 = vld [vmem:[#allocation6 + $0x8] sm:$0xff]  ;;  %v453_v1 = vld [vmem:[#allocation6 + $0x20] sm:$0xff]  ;;  %s1986_s24 = smul.u32 384, %s2394_s27  ;;  %s2219_s21 = smov [#allocation8]  }
  0x5c   : > { %v499_v2 = vld [vmem:[#allocation6 + $0x190] sm:$0xff]  ;;  %v1762_v3 = vpack.c.bf16 %v453_v1, %v450_v0  ;;  %v502_v4 = vld [vmem:[#allocation6 + $0x1a8] sm:$0xff]  ;;  %v449_v5 = vld [vmem:[#allocation6] sm:$0xff]  ;;  %s1987_s10 = smul.u32 6144, %s2203_s15  ;;  %s1449_s15 = scalar_lea.sflag [#allocation5], %s2394_s27 }
  0x5d   : > { %v452_v6 = vld [vmem:[#allocation6 + $0x18] sm:$0xff]  ;;  %v1890_v7 = vpack.c.bf16 %v502_v4, %v499_v2  ;;  %v451_v9 = vld [vmem:[#allocation6 + $0x10] sm:$0xff]  ;;  %v454_v10 = vld [vmem:[#allocation6 + $0x28] sm:$0xff]  ;;  %s2681_s9 = scalar_lea.vmem [#allocation8], %s1986_s24  ;;  %s2129_s19 = sshll.u32 %s2219_s21, 4  ;;  %s2130_s19 = int_to_ptr.vmem [resolvable:$false] %s2129_s19 }
  0x5e   : > { %v1764_v8 = vpack.c.bf16 %v452_v6, %v449_v5  ;;  %v456_v11 = vld [vmem:[#allocation6 + $0x38] sm:$0xff]  ;;  %1763 = vmatprep.subr.bf16.mxu0 %v1762_v3  ;;  %v1892_v12 = vpack.c.bf16 %v454_v10, %v451_v9  ;;  %v459_v13 = vld [vmem:[#allocation6 + $0x50] sm:$0xff]  ;;  %v505_v14 = vld [vmem:[#allocation6 + $0x1c0] sm:$0xff]  ;;  %s1465_s11 = sshll.u32 %s2681_s9, 4  ;;  %s2797_s7 = scalar_lea.hbm %s2854_s3, %s1987_s10  ;;  %s2799_s11 = int_to_ptr.vmem [resolvable:$true] %s1465_s11 }
  0x5f   : > { %v508_v15 = vld [vmem:[#allocation6 + $0x1d8] sm:$0xff]  ;;  %1891 = vmatprep.subr.bf16.mxu1 %v1890_v7  ;;  %v1766_v16 = vpack.c.bf16 %v459_v13, %v456_v11  ;;  %v455_v18 = vld [vmem:[#allocation6 + $0x30] sm:$0xff]  ;;  %v458_v19 = vld [vmem:[#allocation6 + $0x48] sm:$0xff]  ;;  %s2125_s8 = scalar_lea.vmem %s2799_s11, 6144  ;;  %s2131_s25 = scalar_lea.vmem %s2130_s19, 12288 }
  0x60   : > { %1765 = vmatpush1.bf16.msra.mxu0 %v1764_v8  ;;  %v1894_v17 = vpack.c.bf16 %v508_v15, %v505_v14  ;;  %v457_v20 = vld [vmem:[#allocation6 + $0x40] sm:$0xff]  ;;  %1893 = vmatpush3.bf16.msra.mxu1 %v1892_v12  ;;  %v1768_v21 = vpack.c.bf16 %v458_v19, %v455_v18  ;;  %v460_v22 = vld [vmem:[#allocation6 + $0x58] sm:$0xff]  ;;  %v462_v23 = vld [vmem:[#allocation6 + $0x68] sm:$0xff]  ;;  %p2126_p4 = scmp.ne.s32.totalorder %s2799_s11, %s2125_s8  ;;  %p2132_p12 = scmp.lt.s32.totalorder %s2799_s11, %s2130_s19 }
  0x61   : > { %v465_v24 = vld [vmem:[#allocation6 + $0x80] sm:$0xff]  ;;  %1767 = vmatprep.subr.bf16.mxu0 %v1766_v16  ;;  %v1896_v25 = vpack.c.bf16 %v460_v22, %v457_v20  ;;  %v511_v27 = vld [vmem:[#allocation6 + $0x1f0] sm:$0xff]  ;;  %v514_v28 = vld [vmem:[#allocation6 + $0x208] sm:$0xff]  ;;  %p2133_p11 = scmp.lt.s32.totalorder %s2131_s25, %s2125_s8 }
  0x62   : > { %1895 = vmatprep.subr.bf16.mxu1 %v1894_v17  ;;  %v1770_v26 = vpack.c.bf16 %v465_v24, %v462_v23  ;;  %v461_v29 = vld [vmem:[#allocation6 + $0x60] sm:$0xff]  ;;  %v1898_v30 = vpack.c.bf16 %v514_v28, %v511_v27  ;;  %v464_v31 = vld [vmem:[#allocation6 + $0x78] sm:$0xff]  ;;  %v463_v32 = vld [vmem:[#allocation6 + $0x70] sm:$0xff]  ;;  %p2127_p6 = pnand %p2126_p4, %p2338_p10 }
  0x63   : > { %v466_v33 = vld [vmem:[#allocation6 + $0x88] sm:$0xff]  ;;  %v1772_v34 = vpack.c.bf16 %v464_v31, %v461_v29  ;;  %v468_v35 = vld [vmem:[#allocation6 + $0x98] sm:$0xff]  ;;  %v471_v36 = vld [vmem:[#allocation6 + $0xb0] sm:$0xff]  ;;  %p2134_p0 = por %p2133_p11, %p2132_p12 }
  0x64   : > { %1769 = vmatpush1.bf16.msra.mxu0 %v1768_v21  ;;  %v517_v37 = vld [vmem:[#allocation6 + $0x220] sm:$0xff]  ;;  %1897 = vmatpush3.bf16.msra.mxu1 %v1896_v25  ;;  %v1900_v38 = vpack.c.bf16 %v466_v33, %v463_v32  ;;  %v1774_v39 = vpack.c.bf16 %v471_v36, %v468_v35  ;;  %v520_v40 = vld [vmem:[#allocation6 + $0x238] sm:$0xff]  ;;  %v467_v41 = vld [vmem:[#allocation6 + $0x90] sm:$0xff]  ;;  %p2128_p8 = pneg %p2127_p6 }
  0x65   : > { %1771 = vmatprep.subr.bf16.mxu0 %v1770_v26  ;;  %v470_v42 = vld [vmem:[#allocation6 + $0xa8] sm:$0xff]  ;;  %1899 = vmatprep.subr.bf16.mxu1 %v1898_v30  ;;  %v1902_v43 = vpack.c.bf16 %v520_v40, %v517_v37  ;;  %v469_v44 = vld [vmem:[#allocation6 + $0xa0] sm:$0xff]  ;;  %v472_v45 = vld [vmem:[#allocation6 + $0xb8] sm:$0xff] }
  0x66   : > { %v474_v46 = vld [vmem:[#allocation6 + $0xc8] sm:$0xff]  ;;  %v477_v47 = vld [vmem:[#allocation6 + $0xe0] sm:$0xff]  ;;  %v523_v48 = vld [vmem:[#allocation6 + $0x250] sm:$0xff]  ;;  %v1776_v50 = vpack.c.bf16 %v470_v42, %v467_v41  ;;  %v1904_v51 = vpack.c.bf16 %v472_v45, %v469_v44  ;;  %p2135_p5 = pnand %p2134_p0, %p2128_p8 }
  0x67   : > { %v526_v49 = vld [vmem:[#allocation6 + $0x268] sm:$0xff]  ;;  %v1778_v52 = vpack.c.bf16 %v477_v47, %v474_v46  ;;  %v473_v53 = vld [vmem:[#allocation6 + $0xc0] sm:$0xff]  ;;  %v476_v54 = vld [vmem:[#allocation6 + $0xd8] sm:$0xff] }
  0x68   : > { %1773 = vmatpush1.bf16.msra.mxu0 %v1772_v34  ;;  %1901 = vmatpush3.bf16.msra.mxu1 %v1900_v38  ;;  %v475_v55 = vld [vmem:[#allocation6 + $0xd0] sm:$0xff]  ;;  %v1906_v56 = vpack.c.bf16 %v526_v49, %v523_v48  ;;  %v478_v57 = vld [vmem:[#allocation6 + $0xe8] sm:$0xff]  ;;  %v480_v58 = vld [vmem:[#allocation6 + $0xf8] sm:$0xff]  ;;  %v1780_v62 = vpack.c.bf16 %v476_v54, %v473_v53 }
  0x69   : > { %1775 = vmatprep.subr.bf16.mxu0 %v1774_v39  ;;  %1903 = vmatprep.subr.bf16.mxu1 %v1902_v43  ;;  %v483_v59 = vld [vmem:[#allocation6 + $0x110] sm:$0xff]  ;;  %v529_v60 = vld [vmem:[#allocation6 + $0x280] sm:$0xff]  ;;  %v532_v61 = vld [vmem:[#allocation6 + $0x298] sm:$0xff]  ;;  %v1908_v63 = vpack.c.bf16 %v478_v57, %v475_v55 }
  0x6a   : > { %v1782_v0 = vpack.c.bf16 %v483_v59, %v480_v58  ;;  %v479_v1 = vld [vmem:[#allocation6 + $0xf0] sm:$0xff]  ;;  %v482_v2 = vld [vmem:[#allocation6 + $0x108] sm:$0xff]  ;;  %v481_v3 = vld [vmem:[#allocation6 + $0x100] sm:$0xff]  ;;  %v1910_v4 = vpack.c.bf16 %v532_v61, %v529_v60 }
  0x6b   : > { %v484_v5 = vld [vmem:[#allocation6 + $0x118] sm:$0xff]  ;;  %v486_v6 = vld [vmem:[#allocation6 + $0x128] sm:$0xff]  ;;  %v489_v7 = vld [vmem:[#allocation6 + $0x140] sm:$0xff]  ;;  %v1784_v10 = vpack.c.bf16 %v482_v2, %v479_v1 }
  0x6c   : > { %1777 = vmatpush1.bf16.msra.mxu0 %v1776_v50  ;;  %1905 = vmatpush3.bf16.msra.mxu1 %v1904_v51  ;;  %v535_v8 = vld [vmem:[#allocation6 + $0x2b0] sm:$0xff]  ;;  %v538_v9 = vld [vmem:[#allocation6 + $0x2c8] sm:$0xff]  ;;  %v485_v11 = vld [vmem:[#allocation6 + $0x120] sm:$0xff]  ;;  %v1912_v12 = vpack.c.bf16 %v484_v5, %v481_v3  ;;  %v1786_v13 = vpack.c.bf16 %v489_v7, %v486_v6 }
  0x6d   : > { %1779 = vmatprep.subr.bf16.mxu0 %v1778_v52  ;;  %1907 = vmatprep.subr.bf16.mxu1 %v1906_v56  ;;  %v488_v14 = vld [vmem:[#allocation6 + $0x138] sm:$0xff]  ;;  %v487_v15 = vld [vmem:[#allocation6 + $0x130] sm:$0xff]  ;;  %v386_v16 = vld [vmem:[%s2398_s6 + $0x8] sm:$0xff]  ;;  %v1914_v17 = vpack.c.bf16 %v538_v9, %v535_v8 }
  0x6e   : > { %v490_v18 = vld [vmem:[#allocation6 + $0x148] sm:$0xff]  ;;  %v492_v19 = vld [vmem:[#allocation6 + $0x158] sm:$0xff]  ;;  %v495_v20 = vld [vmem:[#allocation6 + $0x170] sm:$0xff]  ;;  %1027 = vmatprep.mubr.f32.mxu1 %v386_v16  ;;  %705 = vmatprep.mubr.f32.mxu0 %v386_v16  ;;  %v1788_v23 = vpack.c.bf16 %v488_v14, %v485_v11 }
  0x6f   : > { %v541_v21 = vld [vmem:[#allocation6 + $0x2e0] sm:$0xff]  ;;  %v544_v22 = vld [vmem:[#allocation6 + $0x2f8] sm:$0xff]  ;;  %v1916_v24 = vpack.c.bf16 %v490_v18, %v487_v15  ;;  %v1790_v25 = vpack.c.bf16 %v495_v20, %v492_v19  ;;  %v491_v26 = vld [vmem:[#allocation6 + $0x150] sm:$0xff] }
  0x70   : > { %1781 = vmatpush1.bf16.msra.mxu0 %v1780_v62  ;;  %1909 = vmatpush3.bf16.msra.mxu1 %v1908_v63  ;;  %v494_v27 = vld [vmem:[#allocation6 + $0x168] sm:$0xff]  ;;  %v493_v28 = vld [vmem:[#allocation6 + $0x160] sm:$0xff]  ;;  %v1918_v29 = vpack.c.bf16 %v544_v22, %v541_v21  ;;  %v496_v30 = vld [vmem:[#allocation6 + $0x178] sm:$0xff] }
  0x71   : > { %1783 = vmatprep.subr.bf16.mxu0 %v1782_v0  ;;  %1911 = vmatprep.subr.bf16.mxu1 %v1910_v4  ;;  %v498_v31 = vld [vmem:[#allocation6 + $0x188] sm:$0xff]  ;;  %v501_v32 = vld [vmem:[#allocation6 + $0x1a0] sm:$0xff]  ;;  %v1792_v33 = vpack.c.bf16 %v494_v27, %v491_v26  ;;  %v1920_v34 = vpack.c.bf16 %v496_v30, %v493_v28  ;;  %v500_v37 = vld [vmem:[#allocation6 + $0x198] sm:$0xff] }
  0x72   : > { %v1794_v35 = vpack.c.bf16 %v501_v32, %v498_v31  ;;  %v497_v36 = vld [vmem:[#allocation6 + $0x180] sm:$0xff]  ;;  %v504_v38 = vld [vmem:[#allocation6 + $0x1b8] sm:$0xff]  ;;  %v507_v39 = vld [vmem:[#allocation6 + $0x1d0] sm:$0xff] }
  0x73   : > { %v1796_v40 = vpack.c.bf16 %v500_v37, %v497_v36  ;;  %v2410_v41 = vld [vmem:[%s2398_s6] sm:$0xff]  ;;  %v1798_v42 = vpack.c.bf16 %v507_v39, %v504_v38  ;;  %v503_v43 = vld [vmem:[#allocation6 + $0x1b0] sm:$0xff]  ;;  %v506_v44 = vld [vmem:[#allocation6 + $0x1c8] sm:$0xff] }
  0x74   : > { %1785 = vmatpush1.bf16.msra.mxu0 %v1784_v10  ;;  %1913 = vmatpush3.bf16.msra.mxu1 %v1912_v12  ;;  %v2413_v45 = vld [vmem:[%s2398_s6 + $0x28] sm:$0xff]  ;;  %v513_v47 = vld [vmem:[#allocation6 + $0x200] sm:$0xff]  ;;  %v1800_v49 = vpack.c.bf16 %v506_v44, %v503_v43  ;;  %v595_v52 = vld [vmem:[#allocation6 + $0x490] sm:$0xff] }
  0x75   : > { %1787 = vmatprep.subr.bf16.mxu0 %v1786_v13  ;;  %1915 = vmatprep.subr.bf16.mxu1 %v1914_v17  ;;  %v510_v46 = vld [vmem:[#allocation6 + $0x1e8] sm:$0xff]  ;;  %v2416_v48 = vld [vmem:[%s2398_s6 + $0x20] sm:$0xff]  ;;  %v512_v54 = vld [vmem:[#allocation6 + $0x1f8] sm:$0xff] }
  0x76   : > { %v2420_v50 = vld [vmem:[%s2398_s6 + $0x48] sm:$0xff]  ;;  %v509_v51 = vld [vmem:[#allocation6 + $0x1e0] sm:$0xff]  ;;  %v1802_v53 = vpack.c.bf16 %v513_v47, %v510_v46  ;;  %v516_v55 = vld [vmem:[#allocation6 + $0x218] sm:$0xff] }
  0x77   : > { %v598_v56 = vld [vmem:[#allocation6 + $0x4a8] sm:$0xff]  ;;  %v519_v57 = vld [vmem:[#allocation6 + $0x230] sm:$0xff]  ;;  %v2425_v62 = vld [vmem:[%s2398_s6 + $0x40] sm:$0xff]  ;;  %v1804_v63 = vpack.c.bf16 %v512_v54, %v509_v51 }
  0x78   : > { %1789 = vmatpush1.bf16.msra.mxu0 %v1788_v23  ;;  %1917 = vmatpush3.bf16.msra.mxu1 %v1916_v24  ;;  %v1922_v58 = vpack.c.bf16 %v598_v56, %v595_v52  ;;  %v547_v59 = vld [vmem:[#allocation6 + $0x310] sm:$0xff]  ;;  %v550_v60 = vld [vmem:[#allocation6 + $0x328] sm:$0xff]  ;;  %v1806_v1 = vpack.c.bf16 %v519_v57, %v516_v55  ;;  %v525_v5 = vld [vmem:[#allocation6 + $0x260] sm:$0xff] }
  0x79   : > { %1791 = vmatprep.subr.bf16.mxu0 %v1790_v25  ;;  %1919 = vmatprep.subr.bf16.mxu1 %v1918_v29  ;;  %v1924_v61 = vpack.c.bf16 %v550_v60, %v547_v59  ;;  %v2428_v0 = vld [vmem:[%s2398_s6 + $0x68] sm:$0xff]  ;;  %v515_v2 = vld [vmem:[#allocation6 + $0x210] sm:$0xff]  ;;  %v601_v6 = vld [vmem:[#allocation6 + $0x4c0] sm:$0xff] }
  0x7a   : > { %v518_v3 = vld [vmem:[#allocation6 + $0x228] sm:$0xff]  ;;  %v604_v7 = vld [vmem:[#allocation6 + $0x4d8] sm:$0xff]  ;;  %v553_v9 = vld [vmem:[#allocation6 + $0x340] sm:$0xff] }
  0x7b   : > { %v522_v4 = vld [vmem:[#allocation6 + $0x248] sm:$0xff]  ;;  %v1926_v8 = vpack.c.bf16 %v604_v7, %v601_v6  ;;  %v556_v10 = vld [vmem:[#allocation6 + $0x358] sm:$0xff]  ;;  %v2433_v11 = vld [vmem:[%s2398_s6 + $0x60] sm:$0xff]  ;;  %v1808_v12 = vpack.c.bf16 %v518_v3, %v515_v2 }
  0x7c   : > { %1793 = vmatpush1.bf16.msra.mxu0 %v1792_v33  ;;  %1921 = vmatpush3.bf16.msra.mxu1 %v1920_v34  ;;  %v2436_v13 = vld [vmem:[%s2398_s6 + $0x88] sm:$0xff]  ;;  %v521_v14 = vld [vmem:[#allocation6 + $0x240] sm:$0xff]  ;;  %v1928_v15 = vpack.c.bf16 %v556_v10, %v553_v9  ;;  %v1810_v16 = vpack.c.bf16 %v525_v5, %v522_v4  ;;  %v524_v17 = vld [vmem:[#allocation6 + $0x258] sm:$0xff] }
  0x7d   : > { %1795 = vmatprep.subr.bf16.mxu0 %v1794_v35  ;;  %1923 = vmatprep.subr.bf16.mxu1 %v1922_v58  ;;  %v607_v18 = vld [vmem:[#allocation6 + $0x4f0] sm:$0xff]  ;;  %v610_v19 = vld [vmem:[#allocation6 + $0x508] sm:$0xff]  ;;  %v528_v20 = vld [vmem:[#allocation6 + $0x278] sm:$0xff]  ;;  %v1812_v26 = vpack.c.bf16 %v524_v17, %v521_v14 }
  0x7e   : > { %v531_v21 = vld [vmem:[#allocation6 + $0x290] sm:$0xff]  ;;  %v1930_v22 = vpack.c.bf16 %v610_v19, %v607_v18  ;;  %v2440_v24 = vld [vmem:[%s2398_s6 + $0x80] sm:$0xff]  ;;  %v562_v25 = vld [vmem:[#allocation6 + $0x388] sm:$0xff] }
  0x7f   : > { %1028 = vmatmul.mubr.f32.vlgmr.msra.gmra.mrb[0].mxu1 %v2410_v41  ;;  %v559_v23 = vld [vmem:[#allocation6 + $0x370] sm:$0xff]  ;;  %v2444_v27 = vld [vmem:[%s2398_s6 + $0xa8] sm:$0xff]  ;;  %v613_v30 = vld [vmem:[#allocation6 + $0x520] sm:$0xff]  ;;  %v1814_v31 = vpack.c.bf16 %v531_v21, %v528_v20 }
  0x80   : > { %1797 = vmatpush1.bf16.msra.mxu0 %v1796_v40  ;;  %1032 = vmatprep.mubr.f32.mxu1 %v2413_v45  ;;  %v527_v28 = vld [vmem:[#allocation6 + $0x270] sm:$0xff]  ;;  %v1932_v29 = vpack.c.bf16 %v562_v25, %v559_v23  ;;  %v530_v32 = vld [vmem:[#allocation6 + $0x288] sm:$0xff]  ;;  %v616_v34 = vld [vmem:[#allocation6 + $0x538] sm:$0xff] }
  0x81   : > { %1799 = vmatprep.subr.bf16.mxu0 %v1798_v42  ;;  %1925 = vmatpush3.bf16.msra.mxu1 %v1924_v61  ;;  %v534_v33 = vld [vmem:[#allocation6 + $0x2a8] sm:$0xff]  ;;  %v537_v35 = vld [vmem:[#allocation6 + $0x2c0] sm:$0xff]  ;;  %v1934_v36 = vpack.c.bf16 %v616_v34, %v613_v30  ;;  %v568_v38 = vld [vmem:[#allocation6 + $0x3b8] sm:$0xff]  ;;  %v1816_v42 = vpack.c.bf16 %v530_v32, %v527_v28 }
  0x82   : > { %1927 = vmatprep.subr.bf16.mxu1 %v1926_v8  ;;  %v565_v37 = vld [vmem:[#allocation6 + $0x3a0] sm:$0xff]  ;;  %v619_v44 = vld [vmem:[#allocation6 + $0x550] sm:$0xff]  ;;  %v622_v46 = vld [vmem:[#allocation6 + $0x568] sm:$0xff]  ;;  %v1818_v47 = vpack.c.bf16 %v537_v35, %v534_v33 }
  0x83   : > { %1033 = vmatmul.mubr.f32.gmra.mrb[2].mxu1 %v2416_v48  ;;  %v2448_v39 = vld [vmem:[%s2398_s6 + $0xa0] sm:$0xff]  ;;  %v1936_v40 = vpack.c.bf16 %v568_v38, %v565_v37  ;;  %v571_v51 = vld [vmem:[#allocation6 + $0x3d0] sm:$0xff]  ;;  %v574_v52 = vld [vmem:[#allocation6 + $0x3e8] sm:$0xff]  ;;  %v1938_v56 = vpack.c.bf16 %v622_v46, %v619_v44 }
  0x84   : > { %1801 = vmatpush1.bf16.msra.mxu0 %v1800_v49  ;;  %1037 = vmatprep.mubr.f32.mxu1 %v2420_v50  ;;  %v533_v43 = vld [vmem:[#allocation6 + $0x2a0] sm:$0xff]  ;;  %v536_v49 = vld [vmem:[#allocation6 + $0x2b8] sm:$0xff]  ;;  %v543_v55 = vld [vmem:[#allocation6 + $0x2f0] sm:$0xff]  ;;  %v1940_v57 = vpack.c.bf16 %v574_v52, %v571_v51 }
  0x85   : > { %1803 = vmatprep.subr.bf16.mxu0 %v1802_v53  ;;  %1929 = vmatpush3.bf16.msra.mxu1 %v1928_v15  ;;  %v2453_v53 = vld [vmem:[%s2398_s6 + $0xc8] sm:$0xff]  ;;  %v540_v54 = vld [vmem:[#allocation6 + $0x2d8] sm:$0xff]  ;;  %v625_v58 = vld [vmem:[#allocation6 + $0x580] sm:$0xff]  ;;  %v1820_v61 = vpack.c.bf16 %v536_v49, %v533_v43 }
  0x86   : > { %1931 = vmatprep.subr.bf16.mxu1 %v1930_v22  ;;  %v628_v59 = vld [vmem:[#allocation6 + $0x598] sm:$0xff]  ;;  %v2457_v60 = vld [vmem:[%s2398_s6 + $0xc0] sm:$0xff]  ;;  %v539_v2 = vld [vmem:[#allocation6 + $0x2d0] sm:$0xff] }
  0x87   : > { %1038 = vmatmul.mubr.f32.gmra.mrb[4].mxu1 %v2425_v62  ;;  %v542_v3 = vld [vmem:[#allocation6 + $0x2e8] sm:$0xff]  ;;  %v580_v4 = vld [vmem:[#allocation6 + $0x418] sm:$0xff]  ;;  %v549_v7 = vld [vmem:[#allocation6 + $0x320] sm:$0xff]  ;;  %v1942_v8 = vpack.c.bf16 %v628_v59, %v625_v58 }
  0x88   : > { %1805 = vmatpush1.bf16.msra.mxu0 %v1804_v63  ;;  %1042 = vmatprep.mubr.f32.mxu1 %v2428_v0  ;;  %v577_v63 = vld [vmem:[#allocation6 + $0x400] sm:$0xff]  ;;  %v2461_v5 = vld [vmem:[%s2398_s6 + $0xe8] sm:$0xff]  ;;  %v631_v10 = vld [vmem:[#allocation6 + $0x5b0] sm:$0xff]  ;;  %v1824_v14 = vpack.c.bf16 %v542_v3, %v539_v2 }
  0x89   : > { %1807 = vmatprep.subr.bf16.mxu0 %v1806_v1  ;;  %1933 = vmatpush3.bf16.msra.mxu1 %v1932_v29  ;;  %v1822_v1 = vpack.c.bf16 %v543_v55, %v540_v54  ;;  %v546_v6 = vld [vmem:[#allocation6 + $0x308] sm:$0xff]  ;;  %v1944_v9 = vpack.c.bf16 %v580_v4, %v577_v63  ;;  %v583_v15 = vld [vmem:[#allocation6 + $0x430] sm:$0xff]  ;;  %v2466_v17 = vld [vmem:[%s2398_s6 + $0xe0] sm:$0xff] }
  0x8a   : > { %1935 = vmatprep.subr.bf16.mxu1 %v1934_v36  ;;  %v1826_v18 = vpack.c.bf16 %v549_v7, %v546_v6  ;;  %v545_v19 = vld [vmem:[#allocation6 + $0x300] sm:$0xff]  ;;  %v548_v20 = vld [vmem:[#allocation6 + $0x318] sm:$0xff]  ;;  %v2469_v21 = vld [vmem:[%s2398_s6 + $0x108] sm:$0xff] }
  0x8b   : > { %1043 = vmatmul.mubr.f32.gmra.mrb[6].mxu1 %v2433_v11  ;;  %v552_v22 = vld [vmem:[#allocation6 + $0x338] sm:$0xff]  ;;  %v555_v25 = vld [vmem:[#allocation6 + $0x350] sm:$0xff]  ;;  %v637_v28 = vld [vmem:[#allocation6 + $0x5e0] sm:$0xff]  ;;  %v1828_v30 = vpack.c.bf16 %v548_v20, %v545_v19 }
  0x8c   : > { %1809 = vmatpush1.bf16.msra.mxu0 %v1808_v12  ;;  %1047 = vmatprep.mubr.f32.mxu1 %v2436_v13  ;;  %v634_v12 = vld [vmem:[#allocation6 + $0x5c8] sm:$0xff]  ;;  %v640_v29 = vld [vmem:[#allocation6 + $0x5f8] sm:$0xff]  ;;  %v2474_v33 = vld [vmem:[%s2398_s6 + $0x100] sm:$0xff]  ;;  %v1830_v37 = vpack.c.bf16 %v555_v25, %v552_v22 }
  0x8d   : > { %1811 = vmatprep.subr.bf16.mxu0 %v1810_v16  ;;  %1937 = vmatpush3.bf16.msra.mxu1 %v1936_v40  ;;  %v586_v16 = vld [vmem:[#allocation6 + $0x448] sm:$0xff]  ;;  %v1946_v23 = vpack.c.bf16 %v634_v12, %v631_v10  ;;  %v592_v32 = vld [vmem:[#allocation6 + $0x478] sm:$0xff]  ;;  %v551_v34 = vld [vmem:[#allocation6 + $0x330] sm:$0xff]  ;;  %v1950_v38 = vpack.c.bf16 %v640_v29, %v637_v28 }
  0x8e   : > { %1939 = vmatprep.subr.bf16.mxu1 %v1938_v56  ;;  %v554_v35 = vld [vmem:[#allocation6 + $0x348] sm:$0xff]  ;;  %v2484_v46 = vld [vmem:[%s2398_s6 + $0x120] sm:$0xff]  ;;  %v560_v49 = vld [vmem:[#allocation6 + $0x378] sm:$0xff] }
  0x8f   : > { %1048 = vmatmul.mubr.f32.gmra.mrb[8].mxu1 %v2440_v24  ;;  %v2477_v36 = vld [vmem:[%s2398_s6 + $0x128] sm:$0xff]  ;;  %v1832_v44 = vpack.c.bf16 %v554_v35, %v551_v34  ;;  %v564_v52 = vld [vmem:[#allocation6 + $0x398] sm:$0xff]  ;;  %v567_v54 = vld [vmem:[#allocation6 + $0x3b0] sm:$0xff] }
  0x90   : > { %1813 = vmatpush1.bf16.msra.mxu0 %v1812_v26  ;;  %1052 = vmatprep.mubr.f32.mxu1 %v2444_v27  ;;  %v1948_v26 = vpack.c.bf16 %v586_v16, %v583_v15  ;;  %v558_v40 = vld [vmem:[#allocation6 + $0x368] sm:$0xff]  ;;  %v2494_v55 = vld [vmem:[%s2398_s6 + $0x140] sm:$0xff]  ;;  %v563_v56 = vld [vmem:[#allocation6 + $0x390] sm:$0xff] }
  0x91   : > { %1815 = vmatprep.subr.bf16.mxu0 %v1814_v31  ;;  %1941 = vmatpush3.bf16.msra.mxu1 %v1940_v57  ;;  %v589_v31 = vld [vmem:[#allocation6 + $0x460] sm:$0xff]  ;;  %v2487_v51 = vld [vmem:[%s2398_s6 + $0x148] sm:$0xff]  ;;  %v572_v2 = vld [vmem:[#allocation6 + $0x3d8] sm:$0xff] }
  0x92   : > { %1943 = vmatprep.subr.bf16.mxu1 %v1942_v8  ;;  %v1952_v43 = vpack.c.bf16 %v592_v32, %v589_v31  ;;  %v566_v57 = vld [vmem:[#allocation6 + $0x3a8] sm:$0xff]  ;;  %v2504_v63 = vld [vmem:[%s2398_s6 + $0x160] sm:$0xff]  ;;  %v576_v4 = vld [vmem:[#allocation6 + $0x3f8] sm:$0xff] }
  0x93   : > { %1053 = vmatmul.mubr.f32.gmra.mrb[10].mxu1 %v2448_v39  ;;  %v2497_v58 = vld [vmem:[%s2398_s6 + $0x168] sm:$0xff]  ;;  %v579_v6 = vld [vmem:[#allocation6 + $0x410] sm:$0xff]  ;;  %v2514_v7 = vld [vmem:[%s2398_s6 + $0x180] sm:$0xff] }
  0x94   : > { %1817 = vmatpush1.bf16.msra.mxu0 %v1816_v42  ;;  %1057 = vmatprep.mubr.f32.mxu1 %v2453_v53  ;;  %v561_v42 = vld [vmem:[#allocation6 + $0x380] sm:$0xff]  ;;  %v570_v59 = vld [vmem:[#allocation6 + $0x3c8] sm:$0xff]  ;;  %v575_v8 = vld [vmem:[#allocation6 + $0x3f0] sm:$0xff] }
  0x95   : > { %1819 = vmatprep.subr.bf16.mxu0 %v1818_v47  ;;  %1945 = vmatpush3.bf16.msra.mxu1 %v1944_v9  ;;  %v557_v47 = vld [vmem:[#allocation6 + $0x360] sm:$0xff]  ;;  %v2507_v3 = vld [vmem:[%s2398_s6 + $0x188] sm:$0xff]  ;;  %v588_v20 = vld [vmem:[#allocation6 + $0x458] sm:$0xff] }
  0x96   : > { %1947 = vmatprep.subr.bf16.mxu1 %v1946_v23  ;;  %v578_v9 = vld [vmem:[#allocation6 + $0x408] sm:$0xff]  ;;  %v2524_v15 = vld [vmem:[%s2398_s6 + $0x1a0] sm:$0xff]  ;;  %v591_v22 = vld [vmem:[#allocation6 + $0x470] sm:$0xff] }
  0x97   : > { %1058 = vmatmul.mubr.f32.gmra.mrb[12].mxu1 %v2457_v60  ;;  %v2517_v10 = vld [vmem:[%s2398_s6 + $0x1a8] sm:$0xff]  ;;  %v581_v16 = vld [vmem:[#allocation6 + $0x420] sm:$0xff]  ;;  %v587_v25 = vld [vmem:[#allocation6 + $0x450] sm:$0xff] }
  0x98   : > { %1821 = vmatpush1.bf16.msra.mxu0 %v1820_v61  ;;  %1062 = vmatprep.mubr.f32.mxu1 %v2461_v5  ;;  %v573_v61 = vld [vmem:[#allocation6 + $0x3e0] sm:$0xff]  ;;  %v582_v12 = vld [vmem:[#allocation6 + $0x428] sm:$0xff]  ;;  %v596_v34 = vld [vmem:[#allocation6 + $0x498] sm:$0xff] }
  0x99   : > { %1823 = vmatprep.subr.bf16.mxu0 %v1822_v1  ;;  %1949 = vmatpush3.bf16.msra.mxu1 %v1948_v26  ;;  %v569_v1 = vld [vmem:[#allocation6 + $0x3c0] sm:$0xff]  ;;  %v2527_v19 = vld [vmem:[%s2398_s6 + $0x1c8] sm:$0xff]  ;;  %v2547_v35 = vld [vmem:[%s2398_s6 + $0x18] sm:$0xff] }
  0x9a   : > { %1951 = vmatprep.subr.bf16.mxu1 %v1950_v38  ;;  %v2534_v23 = vld [vmem:[%s2398_s6 + $0x1c0] sm:$0xff]  ;;  %v590_v26 = vld [vmem:[#allocation6 + $0x468] sm:$0xff]  ;;  %v603_v38 = vld [vmem:[#allocation6 + $0x4d0] sm:$0xff] }
  0x9b   : > { %1063 = vmatmul.mubr.f32.gmra.mrb[14].mxu1 %v2466_v17  ;;  %v2537_v28 = vld [vmem:[%s2398_s6 + $0x1e8] sm:$0xff]  ;;  %v2544_v31 = vld [vmem:[%s2398_s6 + $0x1e0] sm:$0xff] }
  0x9c   : > { %1825 = vmatpush1.bf16.msra.mxu0 %v1824_v14  ;;  %1067 = vmatprep.mubr.f32.mxu1 %v2469_v21  ;;  %v585_v14 = vld [vmem:[#allocation6 + $0x440] sm:$0xff]  ;;  %v594_v29 = vld [vmem:[#allocation6 + $0x488] sm:$0xff] }
  0x9d   : > { %1827 = vmatprep.subr.bf16.mxu0 %v1826_v18  ;;  %1953 = vmatpush3.bf16.msra.mxu1 %v1952_v43  ;;  %v584_v18 = vld [vmem:[#allocation6 + $0x438] sm:$0xff]  ;;  %v593_v32 = vld [vmem:[#allocation6 + $0x480] sm:$0xff]  ;;  %v602_v43 = vld [vmem:[#allocation6 + $0x4c8] sm:$0xff] }
  0x9f   : > { %706 = vmatmul.mubr.f32.vlgmr.msra.gmra.mrb[0].mxu0 %v2410_v41  ;;  %1068 = vmatmul.mubr.f32.gmra.mrb[16].mxu1 %v2474_v33  ;;  %v1834_v41 = vpack.c.bf16 %v561_v42, %v558_v40  ;;  %v2554_v40 = vld [vmem:[%s2398_s6 + $0x10] sm:$0xff] }
  0xa0   : > { %1829 = vmatpush1.bf16.msra.mxu0 %v1828_v30  ;;  %711 = vmatprep.mubr.f32.mxu0 %v2413_v45  ;;  %v1836_v45 = vpack.c.bf16 %v560_v49, %v557_v47  ;;  %v597_v30 = vld [vmem:[#allocation6 + $0x4a0] sm:$0xff]  ;;  %v599_v42 = vld [vmem:[#allocation6 + $0x4b0] sm:$0xff]  ;;  %v606_v47 = vld [vmem:[#allocation6 + $0x4e8] sm:$0xff] }
  0xa1   : > { %1072 = vmatprep.mubr.f32.mxu1 %v2477_v36  ;;  %1831 = vmatprep.subr.bf16.mxu0 %v1830_v37  ;;  %v600_v37 = vld [vmem:[#allocation6 + $0x4b8] sm:$0xff]  ;;  %v609_v49 = vld [vmem:[#allocation6 + $0x500] sm:$0xff] }
  0xa3   : > { %712 = vmatmul.mubr.f32.gmra.mrb[2].mxu0 %v2416_v48  ;;  %1073 = vmatmul.mubr.f32.gmra.mrb[18].mxu1 %v2484_v46  ;;  %v1838_v48 = vpack.c.bf16 %v567_v54, %v564_v52  ;;  %v605_v52 = vld [vmem:[#allocation6 + $0x4e0] sm:$0xff]  ;;  %v608_v54 = vld [vmem:[#allocation6 + $0x4f8] sm:$0xff] }
  0xa4   : > { %1833 = vmatpush1.bf16.msra.mxu0 %v1832_v44  ;;  %717 = vmatprep.mubr.f32.mxu0 %v2420_v50  ;;  %v1840_v50 = vpack.c.bf16 %v566_v57, %v563_v56  ;;  %v2557_v44 = vld [vmem:[%s2398_s6 + $0x38] sm:$0xff]  ;;  %v615_v57 = vld [vmem:[#allocation6 + $0x530] sm:$0xff] }
  0xa5   : > { %1077 = vmatprep.mubr.f32.mxu1 %v2487_v51  ;;  %1835 = vmatprep.subr.bf16.mxu0 %v1834_v41  ;;  %v2564_v41 = vld [vmem:[%s2398_s6 + $0x30] sm:$0xff]  ;;  %v612_v56 = vld [vmem:[#allocation6 + $0x518] sm:$0xff] }
  0xa7   : > { %718 = vmatmul.mubr.f32.gmra.mrb[4].mxu0 %v2425_v62  ;;  %1078 = vmatmul.mubr.f32.gmra.mrb[20].mxu1 %v2494_v55  ;;  %v1842_v62 = vpack.c.bf16 %v573_v61, %v570_v59  ;;  %v611_v59 = vld [vmem:[#allocation6 + $0x510] sm:$0xff]  ;;  %v614_v61 = vld [vmem:[#allocation6 + $0x528] sm:$0xff] }
  0xa8   : > { %1837 = vmatpush1.bf16.msra.mxu0 %v1836_v45  ;;  %723 = vmatprep.mubr.f32.mxu0 %v2428_v0  ;;  %v1844_v0 = vpack.c.bf16 %v572_v2, %v569_v1  ;;  %v2567_v45 = vld [vmem:[%s2398_s6 + $0x58] sm:$0xff]  ;;  %v618_v1 = vld [vmem:[#allocation6 + $0x548] sm:$0xff]  ;;  %v621_v2 = vld [vmem:[#allocation6 + $0x560] sm:$0xff] }
  0xa9   : > { %1082 = vmatprep.mubr.f32.mxu1 %v2497_v58  ;;  %1839 = vmatprep.subr.bf16.mxu0 %v1838_v48  ;;  %v2574_v48 = vld [vmem:[%s2398_s6 + $0x50] sm:$0xff] }
  0xab   : > { %724 = vmatmul.mubr.f32.gmra.mrb[6].mxu0 %v2433_v11  ;;  %1083 = vmatmul.mubr.f32.gmra.mrb[22].mxu1 %v2504_v63  ;;  %v1846_v11 = vpack.c.bf16 %v579_v6, %v576_v4  ;;  %v617_v4 = vld [vmem:[#allocation6 + $0x540] sm:$0xff]  ;;  %v620_v6 = vld [vmem:[#allocation6 + $0x558] sm:$0xff] }
  0xac   : > { %1841 = vmatpush1.bf16.msra.mxu0 %v1840_v50  ;;  %729 = vmatprep.mubr.f32.mxu0 %v2436_v13  ;;  %v1848_v13 = vpack.c.bf16 %v578_v9, %v575_v8  ;;  %v2577_v50 = vld [vmem:[%s2398_s6 + $0x78] sm:$0xff]  ;;  %v627_v9 = vld [vmem:[#allocation6 + $0x590] sm:$0xff] }
  0xad   : > { %1087 = vmatprep.mubr.f32.mxu1 %v2507_v3  ;;  %1843 = vmatprep.subr.bf16.mxu0 %v1842_v62  ;;  %v2584_v62 = vld [vmem:[%s2398_s6 + $0x70] sm:$0xff]  ;;  %v624_v8 = vld [vmem:[#allocation6 + $0x578] sm:$0xff] }
  0xaf   : > { %730 = vmatmul.mubr.f32.gmra.mrb[8].mxu0 %v2440_v24  ;;  %1088 = vmatmul.mubr.f32.gmra.mrb[24].mxu1 %v2514_v7  ;;  %v1850_v24 = vpack.c.bf16 %v585_v14, %v582_v12  ;;  %v623_v12 = vld [vmem:[#allocation6 + $0x570] sm:$0xff]  ;;  %v626_v14 = vld [vmem:[#allocation6 + $0x588] sm:$0xff] }
  0xb0   : > { %1845 = vmatpush1.bf16.msra.mxu0 %v1844_v0  ;;  %735 = vmatprep.mubr.f32.mxu0 %v2444_v27  ;;  %v1852_v27 = vpack.c.bf16 %v584_v18, %v581_v16  ;;  %v2587_v0 = vld [vmem:[%s2398_s6 + $0x98] sm:$0xff]  ;;  %v630_v16 = vld [vmem:[#allocation6 + $0x5a8] sm:$0xff]  ;;  %v633_v18 = vld [vmem:[#allocation6 + $0x5c0] sm:$0xff] }
  0xb1   : > { %1092 = vmatprep.mubr.f32.mxu1 %v2517_v10  ;;  %1847 = vmatprep.subr.bf16.mxu0 %v1846_v11  ;;  %v2594_v11 = vld [vmem:[%s2398_s6 + $0x90] sm:$0xff] }
  0xb3   : > { %736 = vmatmul.mubr.f32.gmra.mrb[10].mxu0 %v2448_v39  ;;  %1093 = vmatmul.mubr.f32.gmra.mrb[26].mxu1 %v2524_v15  ;;  %v1854_v39 = vpack.c.bf16 %v591_v22, %v588_v20  ;;  %v629_v20 = vld [vmem:[#allocation6 + $0x5a0] sm:$0xff]  ;;  %v632_v22 = vld [vmem:[#allocation6 + $0x5b8] sm:$0xff] }
  0xb4   : > { %1849 = vmatpush1.bf16.msra.mxu0 %v1848_v13  ;;  %741 = vmatprep.mubr.f32.mxu0 %v2453_v53  ;;  %v1856_v53 = vpack.c.bf16 %v590_v26, %v587_v25  ;;  %v2597_v13 = vld [vmem:[%s2398_s6 + $0xb8] sm:$0xff]  ;;  %v639_v26 = vld [vmem:[#allocation6 + $0x5f0] sm:$0xff] }
  0xb5   : > { %1097 = vmatprep.mubr.f32.mxu1 %v2527_v19  ;;  %1851 = vmatprep.subr.bf16.mxu0 %v1850_v24  ;;  %v2604_v24 = vld [vmem:[%s2398_s6 + $0xb0] sm:$0xff]  ;;  %v636_v25 = vld [vmem:[#allocation6 + $0x5d8] sm:$0xff] }
  0xb7   : > { %742 = vmatmul.mubr.f32.gmra.mrb[12].mxu0 %v2457_v60  ;;  %1098 = vmatmul.mubr.f32.gmra.mrb[28].mxu1 %v2534_v23  ;;  %v1858_v60 = vpack.c.bf16 %v597_v30, %v594_v29  ;;  %v635_v29 = vld [vmem:[#allocation6 + $0x5d0] sm:$0xff]  ;;  %v638_v30 = vld [vmem:[#allocation6 + $0x5e8] sm:$0xff] }
  0xb8   : > { %1853 = vmatpush1.bf16.msra.mxu0 %v1852_v27  ;;  %747 = vmatprep.mubr.f32.mxu0 %v2461_v5  ;;  %v1860_v5 = vpack.c.bf16 %v596_v34, %v593_v32  ;;  %v2607_v27 = vld [vmem:[%s2398_s6 + $0xd8] sm:$0xff]  ;;  %v1886_v32 = vpack.c.bf16 %v639_v26, %v636_v25 }
  0xb9   : > { %1102 = vmatprep.mubr.f32.mxu1 %v2537_v28  ;;  %1855 = vmatprep.subr.bf16.mxu0 %v1854_v39  ;;  %v411_v39 = vld [vmem:[%s2398_s6 + $0xd0] sm:$0xff]  ;;  %v420_v34 = vld [vmem:[%s2398_s6 + $0x118] sm:$0xff] }
  0xbb   : > { %748 = vmatmul.mubr.f32.gmra.mrb[14].mxu0 %v2466_v17  ;;  %1103 = vmatmul.mubr.f32.gmra.mrb[30].mxu1 %v2544_v31  ;;  %v1862_v17 = vpack.c.bf16 %v603_v38, %v600_v37  ;;  %v428_v37 = vld [vmem:[%s2398_s6 + $0x158] sm:$0xff]  ;;  %v431_v38 = vld [vmem:[%s2398_s6 + $0x170] sm:$0xff] }
  0xbc   : > { %1857 = vmatpush1.bf16.msra.mxu0 %v1856_v53  ;;  %753 = vmatprep.mubr.f32.mxu0 %v2469_v21  ;;  %v1864_v21 = vpack.c.bf16 %v602_v43, %v599_v42  ;;  %v416_v53 = vld [vmem:[%s2398_s6 + $0xf8] sm:$0xff]  ;;  %v439_v43 = vld [vmem:[%s2398_s6 + $0x1b0] sm:$0xff] }
  0xbd   : > { %1172 = vmatprep.mubr.f32.mxu1 %v2547_v35  ;;  %1859 = vmatprep.subr.bf16.mxu0 %v1858_v60  ;;  %v424_v60 = vld [vmem:[%s2398_s6 + $0x138] sm:$0xff] }
  0xbe   : > { %v440_v42 = vld [vmem:[%s2398_s6 + $0x1b8] sm:$0xff] }
  0xbf   : > { %754 = vmatmul.mubr.f32.gmra.mrb[16].mxu0 %v2474_v33  ;;  %1173 = vmatmul.mubr.f32.vlgmr.msra.gmra.mrb[32].mxu1 %v2554_v40  ;;  %v1866_v33 = vpack.c.bf16 %v609_v49, %v606_v47  ;;  %v448_v47 = vld [vmem:[%s2398_s6 + $0x1f8] sm:$0xff]  ;;  %v447_v49 = vld [vmem:[%s2398_s6 + $0x1f0] sm:$0xff] }
  0xc0   : > { %1861 = vmatpush1.bf16.msra.mxu0 %v1860_v5  ;;  %759 = vmatprep.mubr.f32.mxu0 %v2477_v36  ;;  %v1868_v36 = vpack.c.bf16 %v608_v54, %v605_v52  ;;  %v436_v5 = vld [vmem:[%s2398_s6 + $0x198] sm:$0xff] }
  0xc1   : > { %1177 = vmatprep.mubr.f32.mxu1 %v2557_v44  ;;  %1863 = vmatprep.subr.bf16.mxu0 %v1862_v17  ;;  %v443_v17 = vld [vmem:[%s2398_s6 + $0x1d0] sm:$0xff] }
  0xc3   : > { %760 = vmatmul.mubr.f32.gmra.mrb[18].mxu0 %v2484_v46  ;;  %1178 = vmatmul.mubr.f32.gmra.mrb[34].mxu1 %v2564_v41  ;;  %v1870_v46 = vpack.c.bf16 %v615_v57, %v612_v56 }
  0xc4   : > { %1865 = vmatpush1.bf16.msra.mxu0 %v1864_v21  ;;  %765 = vmatprep.mubr.f32.mxu0 %v2487_v51  ;;  %v1872_v51 = vpack.c.bf16 %v614_v61, %v611_v59 }
  0xc5   : > { %1182 = vmatprep.mubr.f32.mxu1 %v2567_v45  ;;  %1867 = vmatprep.subr.bf16.mxu0 %v1866_v33 }
  0xc7   : > { %766 = vmatmul.mubr.f32.gmra.mrb[20].mxu0 %v2494_v55  ;;  %1183 = vmatmul.mubr.f32.gmra.mrb[36].mxu1 %v2574_v48  ;;  %v1874_v55 = vpack.c.bf16 %v621_v2, %v618_v1 }
  0xc8   : > { %1869 = vmatpush1.bf16.msra.mxu0 %v1868_v36  ;;  %771 = vmatprep.mubr.f32.mxu0 %v2497_v58  ;;  %v1876_v58 = vpack.c.bf16 %v620_v6, %v617_v4 }
  0xc9   : > { %1187 = vmatprep.mubr.f32.mxu1 %v2577_v50  ;;  %1871 = vmatprep.subr.bf16.mxu0 %v1870_v46 }
  0xcb   : > { %772 = vmatmul.mubr.f32.gmra.mrb[22].mxu0 %v2504_v63  ;;  %1188 = vmatmul.mubr.f32.gmra.mrb[38].mxu1 %v2584_v62  ;;  %v1878_v63 = vpack.c.bf16 %v627_v9, %v624_v8 }
  0xcc   : > { %1873 = vmatpush1.bf16.msra.mxu0 %v1872_v51  ;;  %777 = vmatprep.mubr.f32.mxu0 %v2507_v3  ;;  %v1880_v3 = vpack.c.bf16 %v626_v14, %v623_v12 }
  0xcd   : > { %1192 = vmatprep.mubr.f32.mxu1 %v2587_v0  ;;  %1875 = vmatprep.subr.bf16.mxu0 %v1874_v55 }
  0xcf   : > { %778 = vmatmul.mubr.f32.gmra.mrb[24].mxu0 %v2514_v7  ;;  %1193 = vmatmul.mubr.f32.gmra.mrb[40].mxu1 %v2594_v11  ;;  %v1882_v7 = vpack.c.bf16 %v633_v18, %v630_v16 }
  0xd0   : > { %1877 = vmatpush1.bf16.msra.mxu0 %v1876_v58  ;;  %783 = vmatprep.mubr.f32.mxu0 %v2517_v10  ;;  %v1884_v10 = vpack.c.bf16 %v632_v22, %v629_v20 }
  0xd1   : > { %1197 = vmatprep.mubr.f32.mxu1 %v2597_v13  ;;  %1879 = vmatprep.subr.bf16.mxu0 %v1878_v63 }
  0xd3   : > { %784 = vmatmul.mubr.f32.gmra.mrb[26].mxu0 %v2524_v15  ;;  %1198 = vmatmul.mubr.f32.gmra.mrb[42].mxu1 %v2604_v24  ;;  %v1888_v15 = vpack.c.bf16 %v638_v30, %v635_v29  ;;  %v274_v29 = vlaneseq }
  0xd4   : > { %1881 = vmatpush1.bf16.msra.mxu0 %v1880_v3  ;;  %789 = vmatprep.mubr.f32.mxu0 %v2527_v19  ;;  %v415_v19 = vld [vmem:[%s2398_s6 + $0xf0] sm:$0xff] }
  0xd5   : > { %1202 = vmatprep.mubr.f32.mxu1 %v2607_v27  ;;  %1883 = vmatprep.subr.bf16.mxu0 %v1882_v7 }
  0xd7   : > { %790 = vmatmul.mubr.f32.gmra.mrb[28].mxu0 %v2534_v23  ;;  %1203 = vmatmul.mubr.f32.gmra.mrb[44].mxu1 %v411_v39  ;;  %v419_v23 = vld [vmem:[%s2398_s6 + $0x110] sm:$0xff] }
  0xd8   : > { %1885 = vmatpush1.bf16.msra.mxu0 %v1884_v10  ;;  %795 = vmatprep.mubr.f32.mxu0 %v2537_v28  ;;  %v423_v28 = vld [vmem:[%s2398_s6 + $0x130] sm:$0xff] }
  0xd9   : > { %1207 = vmatprep.mubr.f32.mxu1 %v416_v53  ;;  %1887 = vmatprep.subr.bf16.mxu0 %v1886_v32 }
  0xdb   : > { %796 = vmatmul.mubr.f32.gmra.mrb[30].mxu0 %v2544_v31  ;;  %1208 = vmatmul.mubr.f32.gmra.mrb[46].mxu1 %v415_v19  ;;  %v427_v31 = vld [vmem:[%s2398_s6 + $0x150] sm:$0xff] }
  0xdc   : > { %1889 = vmatpush1.bf16.msra.mxu0 %v1888_v15  ;;  %866 = vmatprep.mubr.f32.mxu0 %v2547_v35  ;;  %v432_v35 = vld [vmem:[%s2398_s6 + $0x178] sm:$0xff]  ;;  %v275_v15 = vshrl.u32 %v274_v29, 7 }
  0xdd   : > { %1212 = vmatprep.mubr.f32.mxu1 %v420_v34 }
  0xdf   : > { %867 = vmatmul.mubr.f32.vlgmr.msra.gmra.mrb[0].mxu0 %v2554_v40  ;;  %1213 = vmatmul.mubr.f32.gmra.mrb[48].mxu1 %v419_v23  ;;  %v435_v40 = vld [vmem:[%s2398_s6 + $0x190] sm:$0xff] }
  0xe0   : > { %872 = vmatprep.mubr.f32.mxu0 %v2557_v44  ;;  %1217 = vmatprep.mubr.f32.mxu1 %v424_v60  ;;  %v444_v44 = vld [vmem:[%s2398_s6 + $0x1d8] sm:$0xff] }
  0xe3   : > { %873 = vmatmul.mubr.f32.gmra.mrb[2].mxu0 %v2564_v41  ;;  %1218 = vmatmul.mubr.f32.gmra.mrb[50].mxu1 %v423_v28 }
  0xe4   : > { %878 = vmatprep.mubr.f32.mxu0 %v2567_v45  ;;  %1222 = vmatprep.mubr.f32.mxu1 %v428_v37 }
  0xe7   : > { %879 = vmatmul.mubr.f32.gmra.mrb[4].mxu0 %v2574_v48  ;;  %1223 = vmatmul.mubr.f32.gmra.mrb[52].mxu1 %v427_v31 }
  0xe8   : > { %884 = vmatprep.mubr.f32.mxu0 %v2577_v50  ;;  %1227 = vmatprep.mubr.f32.mxu1 %v432_v35 }
  0xeb   : > { %885 = vmatmul.mubr.f32.gmra.mrb[6].mxu0 %v2584_v62  ;;  %1228 = vmatmul.mubr.f32.gmra.mrb[54].mxu1 %v431_v38 }
  0xec   : > { %890 = vmatprep.mubr.f32.mxu0 %v2587_v0  ;;  %1232 = vmatprep.mubr.f32.mxu1 %v436_v5 }
  0xef   : > { %891 = vmatmul.mubr.f32.gmra.mrb[8].mxu0 %v2594_v11  ;;  %1233 = vmatmul.mubr.f32.gmra.mrb[56].mxu1 %v435_v40 }
  0xf0   : > { %896 = vmatprep.mubr.f32.mxu0 %v2597_v13  ;;  %1237 = vmatprep.mubr.f32.mxu1 %v440_v42 }
  0xf3   : > { %897 = vmatmul.mubr.f32.gmra.mrb[10].mxu0 %v2604_v24  ;;  %1238 = vmatmul.mubr.f32.gmra.mrb[58].mxu1 %v439_v43 }
  0xf4   : > { %902 = vmatprep.mubr.f32.mxu0 %v2607_v27  ;;  %1242 = vmatprep.mubr.f32.mxu1 %v444_v44 }
  0xf7   : > { %903 = vmatmul.mubr.f32.gmra.mrb[12].mxu0 %v411_v39  ;;  %1243 = vmatmul.mubr.f32.gmra.mrb[60].mxu1 %v443_v17 }
  0xf8   : > { %908 = vmatprep.mubr.f32.mxu0 %v416_v53  ;;  %1247 = vmatprep.mubr.f32.mxu1 %v448_v47 }
  0xfb   : > { %909 = vmatmul.mubr.f32.gmra.mrb[14].mxu0 %v415_v19  ;;  %1248 = vmatmul.mubr.f32.gmra.mrb[62].mxu1 %v447_v49 }
  0xfc   : > { %914 = vmatprep.mubr.f32.mxu0 %v420_v34 }
  0xff   : > { %915 = vmatmul.mubr.f32.gmra.mrb[16].mxu0 %v419_v23 }
 0x100   : > { %920 = vmatprep.mubr.f32.mxu0 %v424_v60  ;;  %v284_v60 = vsub.s32 2, %v275_v15 }
 0x103   : > { %921 = vmatmul.mubr.f32.gmra.mrb[18].mxu0 %v423_v28  ;;  %v272_v28 = vld [vmem:[%s2853_s2] sm:$0x7] }
 0x104   : > { %926 = vmatprep.mubr.f32.mxu0 %v428_v37 }
 0x107   : > { %927 = vmatmul.mubr.f32.gmra.mrb[20].mxu0 %v427_v31 }
 0x108   : > { %932 = vmatprep.mubr.f32.mxu0 %v432_v35  ;;  %v2678_v35 = vrot.slane %v272_v28, %v284_v60 }
 0x10b   : > { %933 = vmatmul.mubr.f32.gmra.mrb[22].mxu0 %v431_v38 }
 0x10c   : > { %938 = vmatprep.mubr.f32.mxu0 %v436_v5 }
 0x10f   : > { %939 = vmatmul.mubr.f32.gmra.mrb[24].mxu0 %v435_v40 }
 0x110   : > { %944 = vmatprep.mubr.f32.mxu0 %v440_v42 }
 0x113   : > { %945 = vmatmul.mubr.f32.gmra.mrb[26].mxu0 %v439_v43 }
 0x114   : > { %950 = vmatprep.mubr.f32.mxu0 %v444_v44 }
 0x117   : > { %951 = vmatmul.mubr.f32.gmra.mrb[28].mxu0 %v443_v17 }
 0x118   : > { %956 = vmatprep.mubr.f32.mxu0 %v448_v47 }
 0x11b   : > { %957 = vmatmul.mubr.f32.gmra.mrb[30].mxu0 %v447_v49 }
 0x152   : > { %v1634_v21 = vpop.f32.mrb[0].mxu1 }
 0x153   : > { %v1635_v41 = vpop.f32.mrb[1].mxu1 }
 0x154   : > { %v1636_v52 = vadd.f32 %v1635_v41, %v1634_v21 }
 0x156   : > { %v1637_v54 = vpop.f32.mrb[2].mxu1 }
 0x157   : > { %v1638_v45 = vpop.f32.mrb[3].mxu1 }
 0x158   : > { %v1639_v33 = vadd.f32 %v1638_v45, %v1637_v54 }
 0x15a   : > { %v1640_v56 = vpop.f32.mrb[4].mxu1 }
 0x15b   : > { %v1641_v57 = vpop.f32.mrb[5].mxu1 }
 0x15c   : > { %v1642_v36 = vadd.f32 %v1641_v57, %v1640_v56 }
 0x15e   : > { %v1643_v48 = vpop.f32.mrb[6].mxu1 }
 0x15f   : > { %v1644_v59 = vpop.f32.mrb[7].mxu1 }
 0x160   : > { %v2648_v61 = vadd.f32 %v1644_v59, %v1643_v48 }
 0x162   : > { %v1646_v50 = vpop.f32.mrb[8].mxu1 }
 0x163   : > { %v1647_v46 = vpop.f32.mrb[9].mxu1 }
 0x164   : > { %v2650_v1 = vadd.f32 %v1647_v46, %v1646_v50 }
 0x166   : > { %v1649_v2 = vpop.f32.mrb[10].mxu1 }
 0x167   : > { %v1650_v51 = vpop.f32.mrb[11].mxu1 }
 0x168   : > { %v2652_v62 = vadd.f32 %v1650_v51, %v1649_v2 }
 0x16a   : > { %v1652_v4 = vpop.f32.mrb[12].mxu1 }
 0x16b   : > { %v1653_v6 = vpop.f32.mrb[13].mxu1 }
 0x16c   : > { %v2654_v0 = vadd.f32 %v1653_v6, %v1652_v4 }
 0x16e   : > { %v1655_v55 = vpop.f32.mrb[14].mxu1 }
 0x16f   : > { %v1656_v8 = vpop.f32.mrb[15].mxu1 }
 0x170   : > { %v2656_v9 = vadd.f32 %v1656_v8, %v1655_v55 }
 0x172   : > { %v1658_v58 = vpop.f32.mrb[16].mxu1 }
 0x173   : > { %v1659_v11 = vpop.f32.mrb[17].mxu1 }
 0x174   : > { %v2658_v12 = vadd.f32 %v1659_v11, %v1658_v58  ;;  %v280_v11 = vsub.s32 1, %v275_v15 }
 0x176   : > { %v1661_v14 = vpop.f32.mrb[18].mxu1 }
 0x177   : > { %v1662_v13 = vpop.f32.mrb[19].mxu1 }
 0x178   : > { %v2660_v63 = vadd.f32 %v1662_v13, %v1661_v14 }
 0x17a   : > { %v1664_v16 = vpop.f32.mrb[20].mxu1 }
 0x17b   : > { %v1665_v18 = vpop.f32.mrb[21].mxu1 }
 0x17c   : > { %v2662_v3 = vadd.f32 %v1665_v18, %v1664_v16 }
 0x17e   : > { %v1667_v24 = vpop.f32.mrb[22].mxu1 }
 0x17f   : > { %v1668_v20 = vpop.f32.mrb[23].mxu1 }
 0x180   : > { %v2664_v22 = vadd.f32 %v1668_v20, %v1667_v24  ;;  %v2700_v20 = vrot.slane %v272_v28, %v280_v11 }
 0x182   : > { %v1670_v27 = vpop.f32.mrb[24].mxu1 }
 0x183   : > { %v1671_v7 = vpop.f32.mrb[25].mxu1 }
 0x184   : > { %v2666_v25 = vadd.f32 %v1671_v7, %v1670_v27 }
 0x186   : > { %v1673_v26 = vpop.f32.mrb[26].mxu1 }
 0x187   : > { %v1674_v10 = vpop.f32.mrb[27].mxu1 }
 0x188   : > { %v2668_v39 = vadd.f32 %v1674_v10, %v1673_v26 }
 0x18a   : > { %v1676_v30 = vpop.f32.mrb[28].mxu1 }
 0x18b   : > { %v1677_v53 = vpop.f32.mrb[29].mxu1 }
 0x18c   : > { %v2670_v32 = vadd.f32 %v1677_v53, %v1676_v30 }
 0x18e   : > { %v1679_v19 = vpop.f32.mrb[30].mxu1 }
 0x18f   : > { %v1680_v34 = vpop.f32.mrb[31].mxu1 }
 0x190   : > { %v2672_v23 = vadd.f32 %v1680_v34, %v1679_v19 }
 0x192   : > { %v1714_v37 = vpop.f32.mrb[32].mxu1 }
 0x193   : > { %v1715_v31 = vpop.f32.mrb[33].mxu1 }
 0x194   : > { %v1716_v38 = vadd.f32 %v1715_v31, %v1714_v37 }
 0x196   : > { %v1175_v5 = vadd.f32 %v1716_v38, %v1636_v52  ;;  %v1717_v40 = vpop.f32.mrb[34].mxu1 }
 0x197   : > { %v1718_v42 = vpop.f32.mrb[35].mxu1 }
 0x198   : > { %v1255_v43 = vadd.f32 %v1175_v5, %v2678_v35  ;;  %v1719_v44 = vadd.f32 %v1718_v42, %v1717_v40 }
 0x19a   : > { %1402 = vst [vmem:[%s2681_s9 + $0x10] sm:$0xff] %v1255_v43  ;;  %v1180_v17 = vadd.f32 %v1719_v44, %v1639_v33  ;;  %v1720_v47 = vpop.f32.mrb[36].mxu1 }
 0x19b   : > { %v1721_v49 = vpop.f32.mrb[37].mxu1 }
 0x19c   : > { %v1258_v21 = vadd.f32 %v1180_v17, %v2678_v35  ;;  %v1722_v41 = vadd.f32 %v1721_v49, %v1720_v47 }
 0x19e   : > { %1405 = vst [vmem:[%s2681_s9 + $0x28] sm:$0xff] %v1258_v21  ;;  %v1185_v52 = vadd.f32 %v1722_v41, %v1642_v36  ;;  %v1723_v54 = vpop.f32.mrb[38].mxu1 }
 0x19f   : > { %v1724_v45 = vpop.f32.mrb[39].mxu1 }
 0x1a0   : > { %v1261_v56 = vadd.f32 %v1185_v52, %v2678_v35  ;;  %v1725_v57 = vadd.f32 %v1724_v45, %v1723_v54 }
 0x1a2   : > { %1408 = vst [vmem:[%s2681_s9 + $0x40] sm:$0xff] %v1261_v56  ;;  %v1190_v48 = vadd.f32 %v1725_v57, %v2648_v61  ;;  %v1726_v59 = vpop.f32.mrb[40].mxu1  ;;  %v276_v61 = vsub.s32 0, %v275_v15 }
 0x1a3   : > { %v1727_v50 = vpop.f32.mrb[41].mxu1 }
 0x1a4   : > { %v1264_v33 = vadd.f32 %v1190_v48, %v2678_v35  ;;  %v1728_v46 = vadd.f32 %v1727_v50, %v1726_v59  ;;  %v2698_v18 = vrot.slane %v272_v28, %v276_v61 }
 0x1a6   : > { %1411 = vst [vmem:[%s2681_s9 + $0x58] sm:$0xff] %v1264_v33  ;;  %v1195_v2 = vadd.f32 %v1728_v46, %v2650_v1  ;;  %v1729_v51 = vpop.f32.mrb[42].mxu1 }
 0x1a7   : > { %v1730_v36 = vpop.f32.mrb[43].mxu1 }
 0x1a8   : > { %v1267_v4 = vadd.f32 %v1195_v2, %v2678_v35  ;;  %v1731_v6 = vadd.f32 %v1730_v36, %v1729_v51 }
 0x1aa   : > { %1414 = vst [vmem:[%s2681_s9 + $0x70] sm:$0xff] %v1267_v4  ;;  %v1200_v55 = vadd.f32 %v1731_v6, %v2652_v62  ;;  %v1732_v8 = vpop.f32.mrb[44].mxu1 }
 0x1ab   : > { %v1733_v58 = vpop.f32.mrb[45].mxu1 }
 0x1ac   : > { %v1270_v14 = vadd.f32 %v1200_v55, %v2678_v35  ;;  %v1734_v13 = vadd.f32 %v1733_v58, %v1732_v8 }
 0x1ae   : > { %1417 = vst [vmem:[%s2681_s9 + $0x88] sm:$0xff] %v1270_v14  ;;  %v1205_v16 = vadd.f32 %v1734_v13, %v2654_v0  ;;  %v1735_v1 = vpop.f32.mrb[46].mxu1 }
 0x1af   : > { %v1736_v24 = vpop.f32.mrb[47].mxu1 }
 0x1b0   : > { %v1273_v62 = vadd.f32 %v1205_v16, %v2678_v35  ;;  %v1737_v27 = vadd.f32 %v1736_v24, %v1735_v1 }
 0x1b2   : > { %v868_v7 = vpop.f32.mrb[0].mxu0  ;;  %1420 = vst [vmem:[%s2681_s9 + $0xa0] sm:$0xff] %v1273_v62  ;;  %v1210_v26 = vadd.f32 %v1737_v27, %v2656_v9  ;;  %v1738_v29 = vpop.f32.mrb[48].mxu1 }
 0x1b3   : > { %v1253_v10 = vadd.f32 %v868_v7, %v2698_v18  ;;  %v870_v0 = vpop.f32.mrb[1].mxu0  ;;  %v1739_v53 = vpop.f32.mrb[49].mxu1 }
 0x1b4   : > { %v1254_v30 = vadd.f32 %v870_v0, %v2700_v20  ;;  %v1276_v15 = vadd.f32 %v1210_v26, %v2678_v35  ;;  %v1740_v19 = vadd.f32 %v1739_v53, %v1738_v29 }
 0x1b5   : > { %1400 = vst [vmem:[%s2681_s9] sm:$0xff] %v1253_v10 }
 0x1b6   : > { %1401 = vst [vmem:[%s2681_s9 + $0x8] sm:$0xff] %v1254_v30  ;;  %v874_v34 = vpop.f32.mrb[2].mxu0  ;;  %1423 = vst [vmem:[%s2681_s9 + $0xb8] sm:$0xff] %v1276_v15  ;;  %v1215_v60 = vadd.f32 %v1740_v19, %v2658_v12  ;;  %v1741_v28 = vpop.f32.mrb[50].mxu1 }
 0x1b7   : > { %v1256_v9 = vadd.f32 %v874_v34, %v2698_v18  ;;  %v876_v37 = vpop.f32.mrb[3].mxu0  ;;  %v1742_v38 = vpop.f32.mrb[51].mxu1 }
 0x1b8   : > { %v1257_v31 = vadd.f32 %v876_v37, %v2700_v20  ;;  %v1279_v5 = vadd.f32 %v1215_v60, %v2678_v35  ;;  %v1743_v40 = vadd.f32 %v1742_v38, %v1741_v28 }
 0x1b9   : > { %1403 = vst [vmem:[%s2681_s9 + $0x18] sm:$0xff] %v1256_v9 }
 0x1ba   : > { %1404 = vst [vmem:[%s2681_s9 + $0x20] sm:$0xff] %v1257_v31  ;;  %v880_v42 = vpop.f32.mrb[4].mxu0  ;;  %1426 = vst [vmem:[%s2681_s9 + $0xd0] sm:$0xff] %v1279_v5  ;;  %v1220_v43 = vadd.f32 %v1743_v40, %v2660_v63  ;;  %v1744_v44 = vpop.f32.mrb[52].mxu1 }
 0x1bb   : > { %v1259_v12 = vadd.f32 %v880_v42, %v2698_v18  ;;  %v882_v17 = vpop.f32.mrb[5].mxu0  ;;  %v1745_v49 = vpop.f32.mrb[53].mxu1 }
 0x1bc   : > { %v1260_v47 = vadd.f32 %v882_v17, %v2700_v20  ;;  %v1282_v21 = vadd.f32 %v1220_v43, %v2678_v35  ;;  %v1746_v41 = vadd.f32 %v1745_v49, %v1744_v44 }
 0x1bd   : > { %1406 = vst [vmem:[%s2681_s9 + $0x30] sm:$0xff] %v1259_v12 }
 0x1be   : > { %1407 = vst [vmem:[%s2681_s9 + $0x38] sm:$0xff] %v1260_v47  ;;  %v886_v52 = vpop.f32.mrb[6].mxu0  ;;  %1429 = vst [vmem:[%s2681_s9 + $0xe8] sm:$0xff] %v1282_v21  ;;  %v1225_v54 = vadd.f32 %v1746_v41, %v2662_v3  ;;  %v1747_v45 = vpop.f32.mrb[54].mxu1 }
 0x1bf   : > { %v1262_v63 = vadd.f32 %v886_v52, %v2698_v18  ;;  %v888_v56 = vpop.f32.mrb[7].mxu0  ;;  %v1748_v48 = vpop.f32.mrb[55].mxu1 }
 0x1c0   : > { %v1263_v57 = vadd.f32 %v888_v56, %v2700_v20  ;;  %v1285_v59 = vadd.f32 %v1225_v54, %v2678_v35  ;;  %v1749_v50 = vadd.f32 %v1748_v48, %v1747_v45 }
 0x1c1   : > { %1409 = vst [vmem:[%s2681_s9 + $0x48] sm:$0xff] %v1262_v63 }
 0x1c2   : > { %1410 = vst [vmem:[%s2681_s9 + $0x50] sm:$0xff] %v1263_v57  ;;  %v892_v33 = vpop.f32.mrb[8].mxu0  ;;  %1432 = vst [vmem:[%s2681_s9 + $0x100] sm:$0xff] %v1285_v59  ;;  %v1230_v46 = vadd.f32 %v1749_v50, %v2664_v22  ;;  %v1750_v2 = vpop.f32.mrb[56].mxu1 }
 0x1c3   : > { %v1265_v3 = vadd.f32 %v892_v33, %v2698_v18  ;;  %v894_v51 = vpop.f32.mrb[9].mxu0  ;;  %v1751_v4 = vpop.f32.mrb[57].mxu1 }
 0x1c4   : > { %v1266_v36 = vadd.f32 %v894_v51, %v2700_v20  ;;  %v1288_v6 = vadd.f32 %v1230_v46, %v2678_v35  ;;  %v1752_v55 = vadd.f32 %v1751_v4, %v1750_v2 }
 0x1c5   : > { %1412 = vst [vmem:[%s2681_s9 + $0x60] sm:$0xff] %v1265_v3 }
 0x1c6   : > { %1413 = vst [vmem:[%s2681_s9 + $0x68] sm:$0xff] %v1266_v36  ;;  %v898_v8 = vpop.f32.mrb[10].mxu0  ;;  %1435 = vst [vmem:[%s2681_s9 + $0x118] sm:$0xff] %v1288_v6  ;;  %v1235_v61 = vadd.f32 %v1752_v55, %v2666_v25  ;;  %v1753_v58 = vpop.f32.mrb[58].mxu1 }
 0x1c7   : > { %v1268_v22 = vadd.f32 %v898_v8, %v2698_v18  ;;  %v900_v11 = vpop.f32.mrb[11].mxu0  ;;  %v1754_v13 = vpop.f32.mrb[59].mxu1 }
 0x1c8   : > { %v1269_v14 = vadd.f32 %v900_v11, %v2700_v20  ;;  %v1291_v16 = vadd.f32 %v1235_v61, %v2678_v35  ;;  %v1755_v1 = vadd.f32 %v1754_v13, %v1753_v58 }
 0x1c9   : > { %1415 = vst [vmem:[%s2681_s9 + $0x78] sm:$0xff] %v1268_v22 }
 0x1ca   : > { %1416 = vst [vmem:[%s2681_s9 + $0x80] sm:$0xff] %v1269_v14  ;;  %v904_v24 = vpop.f32.mrb[12].mxu0  ;;  %1438 = vst [vmem:[%s2681_s9 + $0x130] sm:$0xff] %v1291_v16  ;;  %v1240_v62 = vadd.f32 %v1755_v1, %v2668_v39  ;;  %v1756_v27 = vpop.f32.mrb[60].mxu1 }
 0x1cb   : > { %v1271_v25 = vadd.f32 %v904_v24, %v2698_v18  ;;  %v906_v7 = vpop.f32.mrb[13].mxu0  ;;  %v1757_v10 = vpop.f32.mrb[61].mxu1 }
 0x1cc   : > { %v1272_v26 = vadd.f32 %v906_v7, %v2700_v20  ;;  %v1294_v29 = vadd.f32 %v1240_v62, %v2678_v35  ;;  %v1758_v0 = vadd.f32 %v1757_v10, %v1756_v27 }
 0x1cd   : > { %1418 = vst [vmem:[%s2681_s9 + $0x90] sm:$0xff] %v1271_v25 }
 0x1ce   : > { %1419 = vst [vmem:[%s2681_s9 + $0x98] sm:$0xff] %v1272_v26  ;;  %v910_v30 = vpop.f32.mrb[14].mxu0  ;;  %1441 = vst [vmem:[%s2681_s9 + $0x148] sm:$0xff] %v1294_v29  ;;  %v1245_v53 = vadd.f32 %v1758_v0, %v2670_v32  ;;  %v1759_v15 = vpop.f32.mrb[62].mxu1 }
 0x1cf   : > { %v1274_v39 = vadd.f32 %v910_v30, %v2698_v18  ;;  %v912_v19 = vpop.f32.mrb[15].mxu0  ;;  %v1760_v60 = vpop.f32.mrb[63].mxu1 }
 0x1d0   : > { %v1275_v34 = vadd.f32 %v912_v19, %v2700_v20  ;;  %v1297_v9 = vadd.f32 %v1245_v53, %v2678_v35  ;;  %v1761_v28 = vadd.f32 %v1760_v60, %v1759_v15 }
 0x1d1   : > { %1421 = vst [vmem:[%s2681_s9 + $0xa8] sm:$0xff] %v1274_v39 }
 0x1d2   : > { %1422 = vst [vmem:[%s2681_s9 + $0xb0] sm:$0xff] %v1275_v34  ;;  %v916_v37 = vpop.f32.mrb[16].mxu0  ;;  %1444 = vst [vmem:[%s2681_s9 + $0x160] sm:$0xff] %v1297_v9  ;;  %v1250_v32 = vadd.f32 %v1761_v28, %v2672_v23 }
 0x1d3   : > { %v1277_v31 = vadd.f32 %v916_v37, %v2698_v18  ;;  %v918_v38 = vpop.f32.mrb[17].mxu0 }
 0x1d4   : > { %v1278_v5 = vadd.f32 %v918_v38, %v2700_v20  ;;  %v1300_v40 = vadd.f32 %v1250_v32, %v2678_v35 }
 0x1d5   : > { %1424 = vst [vmem:[%s2681_s9 + $0xc0] sm:$0xff] %v1277_v31 }
 0x1d6   : > { %1425 = vst [vmem:[%s2681_s9 + $0xc8] sm:$0xff] %v1278_v5  ;;  %v922_v42 = vpop.f32.mrb[18].mxu0  ;;  %1447 = vst [vmem:[%s2681_s9 + $0x178] sm:$0xff] %v1300_v40 }
 0x1d7   : > { %v1280_v43 = vadd.f32 %v922_v42, %v2698_v18  ;;  %v924_v12 = vpop.f32.mrb[19].mxu0 }
 0x1d8   : > { %v1281_v23 = vadd.f32 %v924_v12, %v2700_v20 }
 0x1d9   : > { %1427 = vst [vmem:[%s2681_s9 + $0xd8] sm:$0xff] %v1280_v43 }
 0x1da   : > { %1428 = vst [vmem:[%s2681_s9 + $0xe0] sm:$0xff] %v1281_v23  ;;  %v928_v44 = vpop.f32.mrb[20].mxu0 }
 0x1db   : > { %v1283_v17 = vadd.f32 %v928_v44, %v2698_v18  ;;  %v930_v47 = vpop.f32.mrb[21].mxu0 }
 0x1dc   : > { %v1284_v35 = vadd.f32 %v930_v47, %v2700_v20 }
 0x1dd   : > { %1430 = vst [vmem:[%s2681_s9 + $0xf0] sm:$0xff] %v1283_v17 }
 0x1de   : > { %1431 = vst [vmem:[%s2681_s9 + $0xf8] sm:$0xff] %v1284_v35  ;;  %v934_v49 = vpop.f32.mrb[22].mxu0 }
 0x1df   : > { %v1286_v21 = vadd.f32 %v934_v49, %v2698_v18  ;;  %v936_v41 = vpop.f32.mrb[23].mxu0 }
 0x1e0   : > { %v1287_v52 = vadd.f32 %v936_v41, %v2700_v20 }
 0x1e1   : > { %1433 = vst [vmem:[%s2681_s9 + $0x108] sm:$0xff] %v1286_v21 }
 0x1e2   : > { %1434 = vst [vmem:[%s2681_s9 + $0x110] sm:$0xff] %v1287_v52  ;;  %v940_v54 = vpop.f32.mrb[24].mxu0 }
 0x1e3   : > { %v1289_v63 = vadd.f32 %v940_v54, %v2698_v18  ;;  %v942_v45 = vpop.f32.mrb[25].mxu0 }
 0x1e4   : > { %v1290_v56 = vadd.f32 %v942_v45, %v2700_v20 }
 0x1e5   : > { %1436 = vst [vmem:[%s2681_s9 + $0x120] sm:$0xff] %v1289_v63 }
 0x1e6   : > { %1437 = vst [vmem:[%s2681_s9 + $0x128] sm:$0xff] %v1290_v56  ;;  %v946_v57 = vpop.f32.mrb[26].mxu0 }
 0x1e7   : > { %v1292_v48 = vadd.f32 %v946_v57, %v2698_v18  ;;  %v948_v59 = vpop.f32.mrb[27].mxu0 }
 0x1e8   : > { %v1293_v50 = vadd.f32 %v948_v59, %v2700_v20 }
 0x1e9   : > { %1439 = vst [vmem:[%s2681_s9 + $0x138] sm:$0xff] %v1292_v48 }
 0x1ea   : > { %1440 = vst [vmem:[%s2681_s9 + $0x140] sm:$0xff] %v1293_v50  ;;  %v952_v33 = vpop.f32.mrb[28].mxu0 }
 0x1eb   : > { %v1295_v46 = vadd.f32 %v952_v33, %v2698_v18  ;;  %v954_v3 = vpop.f32.mrb[29].mxu0 }
 0x1ec   : > { %v1296_v2 = vadd.f32 %v954_v3, %v2700_v20 }
 0x1ed   : > { %1442 = vst [vmem:[%s2681_s9 + $0x150] sm:$0xff] %v1295_v46 }
 0x1ee   : > { %1443 = vst [vmem:[%s2681_s9 + $0x158] sm:$0xff] %v1296_v2  ;;  %v958_v51 = vpop.f32.mrb[30].mxu0 }
 0x1ef   : > { %v1298_v36 = vadd.f32 %v958_v51, %v2698_v18  ;;  %v960_v4 = vpop.f32.mrb[31].mxu0 }
 0x1f0   : > { %v1299_v6 = vadd.f32 %v960_v4, %v2700_v20 }
 0x1f1   : > { %1445 = vst [vmem:[%s2681_s9 + $0x168] sm:$0xff] %v1298_v36 }
 0x1f2   : > { %1446 = vst [vmem:[%s2681_s9 + $0x170] sm:$0xff] %v1299_v6 }
 0x1f3   : > { %2138 = shalt.err (!%p2135_p5)
}
 0x1f4   : > { %s2139_s29 = scalar_lea.hbm %s2797_s7, 6144  ;;  %s2143_s20 = scalar_lea.hbm %s2854_s3, 12288 }
 0x1f5   : > { %p2140_p9 = scmp.ne.s32.totalorder %s2797_s7, %s2139_s29  ;;  %p2144_p3 = scmp.lt.u32.totalorder %s2797_s7, %s2854_s3 }
 0x1f6   : > { %p2145_p7 = scmp.lt.u32.totalorder %s2143_s20, %s2139_s29  ;;  %p2147_p4 = scmp.lt.u32.totalorder %s2139_s29, %s2797_s7 }
 0x1f7   : > { %p2141_p1 = pnand %p2140_p9, %p2338_p10 }
 0x1f8   : > { %p2146_p13 = por %p2145_p7, %p2144_p3 }
 0x1f9   : > { %p2142_p2 = pneg %p2141_p1 }
 0x1fa   : > { %p2148_p6 = por %p2147_p4, %p2146_p13 }
 0x1fc   : > { %p2149_p8 = pnand %p2148_p6, %p2142_p2 }
 0x1fe   : > { %2152 = shalt.err (!%p2149_p8)
}
 0x1ff   : > { %s2220_s9 = smov 384   ;;  %s2221_s10 = smov 24  }
 0x200   : > { %1994 = dma.vmem_to_hbm [thread:$0]  (%p2338_p10), %s2799_s11, 6144, %s2797_s7, %s1449_s15, %s2220_s9, %s2220_s9, %s2221_s10  }
 0x201 PF: > { %s1480_s18 = sand.u32 1, %s2191_s12   ;;  %p2872_p12 = scmp.ne.s32.totalorder %s2862_s23, 0 }
 0x202   : > { %p2873_p11 = scmp.ge.s32.totalorder %s2211_s17, 2  ;;  %s1481_s26 = scalar_lea.sflag [#allocation5], %s1480_s18 }
 0x204   : > { %p2005_p0 = pnand %p2873_p11, %p2872_p12 }
 0x206   : > { %2186 = dma.done.wait (!%p2005_p0), %s1481_s26, 6144  }
 0x207   : > { %2188 = vsyncadd (!%p2005_p0), %s1481_s26, 4294961152  ;;  %s20_s17 = sadd.s32 1, %s2211_s17   ;;  %s2874_s12 = smov %s2195_s13 }
 0x208   : > { %p17_p5 = scmp.ge.s32.totalorder %s20_s17, 4   ;;  %s2875_s13 = smov %s2199_s14 }
 0x209   : > { %s2876_s14 = smov %s2347_s5  ;;  %s2877_s15 = smov %s2207_s16 }
 0x20a   : > { %s2878_s16 = smov %s2880_s28  ;;  %19 = sbr.rel (!%p17_p5) target bundleno = 7 (0x7), region = 93 }
 0x211   :  { %1486 = vsyncpa [#allocation4], 1 }
 0x212   :  { %1488 = vsyncpa [#allocation4 + $0x1], 1 }
 0x213   :  { %1489 = vsyncpa [#allocation7], 1 }
 0x214   :  { %1490 = vsyncpa [#allocation5], 1 }
 0x215   :  { %1492 = vsyncpa [#allocation5 + $0x1], 1 }

</bundles_post_ra>
